<compile_context>
chip_gen: v5e
topology: v5e:2x2
jax: 0.10.0
libtpu: 0.0.40
codegen_flags: <defaults>
</compile_context>

<pallas_src>
import math
import functools

import jax
import jax.numpy as jnp
from jax import lax
from jax.experimental import pallas as pl
from jax.experimental.pallas import tpu as pltpu


# ----------------------------- config ---------------------------------------

class Config:
    block_size = 64
    vocab_size = 60
    n_layer = 2
    n_head = 2
    n_embd = 32


LANE = 128  # TPU vreg lane width; logits are padded to a multiple of this.


# ----------------------------- kernel helpers --------------------------------

def _layernorm(x, g, b, eps=1e-5):
    # x: [N, C]; g/b: [1, C] (broadcast over rows)
    mu = jnp.mean(x, axis=-1, keepdims=True)
    xc = x - mu
    var = jnp.mean(xc * xc, axis=-1, keepdims=True)
    return xc * lax.rsqrt(var + eps) * g + b


def _gelu_tanh(x):
    # PyTorch nn.GELU(approximate='tanh')
    c = math.sqrt(2.0 / math.pi)
    return 0.5 * x * (1.0 + jnp.tanh(c * (x + 0.044715 * x * x * x)))


# ----------------------------- fused forward kernel --------------------------

def gpt_kernel(x_ref, bias_ref,
               ln1g_ref, ln1b_ref, wqkv_ref, bqkv_ref, wprh_ref, bpr_ref,
               ln2g_ref, ln2b_ref, wfc_ref, bfc_ref, wmp_ref, bmp_ref,
               lnfg_ref, lnfb_ref, wlm_ref,
               o_ref, *, n_layer, n_head, head_dim):
    # x: [B*T, C] residual stream, resident in VMEM for the whole forward.
    x = x_ref[...]
    bias = bias_ref[...]                     # [B*T, B*T] additive causal mask
    BT, C = x.shape
    scale = 1.0 / math.sqrt(head_dim)

    for l in range(n_layer):                 # static unroll (small n_layer)
        # ----- attention branch -----
        h = _layernorm(x, ln1g_ref[l], ln1b_ref[l])
        qkv = jnp.dot(h, wqkv_ref[l],
                      preferred_element_type=jnp.float32) + bqkv_ref[l]

        attn = jnp.zeros((BT, C), jnp.float32)
        for hd_i in range(n_head):
            lo = hd_i * head_dim
            qh = qkv[:, lo:lo + head_dim]                 # [BT, hd]
            kh = qkv[:, C + lo:C + lo + head_dim]         # [BT, hd]
            vh = qkv[:, 2 * C + lo:2 * C + lo + head_dim]  # [BT, hd]

            # scores (nt-matmul, no transpose op) + precomputed additive mask
            s = lax.dot_general(qh, kh, (((1,), (1,)), ((), ())),
                                preferred_element_type=jnp.float32)
            s = s * scale + bias
            s = s - jnp.max(s, axis=-1, keepdims=True)
            p = jnp.exp(s)
            inv = pl.reciprocal(jnp.sum(p, axis=-1, keepdims=True), approx=True)
            yh = jnp.dot(p * inv, vh,
                         preferred_element_type=jnp.float32)          # [BT, hd]
            # per-head output projection (wpr pre-split [hd, C]); accumulate
            # instead of concatenating head outputs along lanes.
            attn = attn + jnp.dot(yh, wprh_ref[l, hd_i],
                                  preferred_element_type=jnp.float32)
        x = x + attn + bpr_ref[l]

        # ----- MLP branch -----
        h2 = _layernorm(x, ln2g_ref[l], ln2b_ref[l])
        m = jnp.dot(h2, wfc_ref[l],
                    preferred_element_type=jnp.float32) + bfc_ref[l]
        m = _gelu_tanh(m)
        x = x + jnp.dot(m, wmp_ref[l],
                        preferred_element_type=jnp.float32) + bmp_ref[l]

    # ----- final LN + tied lm_head (vocab padded to 128 lanes -> dense vst) ---
    hf = _layernorm(x, lnfg_ref[...], lnfb_ref[...])
    o_ref[...] = jnp.dot(hf, wlm_ref[...], preferred_element_type=jnp.float32)


# ----------------------------- model forward ---------------------------------

def gpt_forward(idx, params, cfg):
    # idx: [B, T] int32 -> logits [B, T, V]. (targets=None path; loss not built.)
    B, T = idx.shape
    C, V, nh = cfg.n_embd, cfg.vocab_size, cfg.n_head
    Vp = params["lm_head_pad"].shape[1]

    # embedding gathers stay in plain JAX (glue)
    tok = params["wte"][idx]                       # [B, T, C]
    pos = params["wpe"][:T]                        # [T, C]
    x = (tok + pos[None, :, :]).reshape(B * T, C).astype(jnp.float32)

    # additive attention bias over the flattened B*T axis:
    # allowed iff same sequence AND causal; -1e30 otherwise.
    r = jnp.arange(B * T)
    same_seq = (r[:, None] // T) == (r[None, :] // T)
    causal = r[None, :] <= r[:, None]
    bias = jnp.where(same_seq & causal, 0.0, -1e30).astype(jnp.float32)

    kernel = functools.partial(gpt_kernel, n_layer=cfg.n_layer,
                               n_head=nh, head_dim=C // nh)

    operands = (x, bias,
                params["ln1g"], params["ln1b"], params["wqkv"], params["bqkv"],
                params["wpr_h"], params["bpr"], params["ln2g"], params["ln2b"],
                params["wfc"], params["bfc"], params["wmp"], params["bmp"],
                params["lnf_g"], params["lnf_b"], params["lm_head_pad"])

    vmem = pl.BlockSpec(memory_space=pltpu.MemorySpace.VMEM)
    logits_pad = pl.pallas_call(
        kernel,
        out_shape=jax.ShapeDtypeStruct((B * T, Vp), jnp.float32),
        in_specs=[vmem] * len(operands),
        out_specs=vmem,
    )(*operands)

    return logits_pad[:, :V].reshape(B, T, V)


# ----------------------------- parameter init (deterministic) ----------------

def init_params(cfg, key):
    C, V, L = cfg.n_embd, cfg.vocab_size, cfg.n_layer
    nh = cfg.n_head
    hd = C // nh
    std = 0.02
    std_proj = 0.02 * (2 * L) ** (-0.5)          # NANOGPT_SCALE_INIT
    keys = jax.random.split(key, 2 + 4 * L)
    it = iter(keys)

    wte = std * jax.random.normal(next(it), (V, C), jnp.float32)   # tied lm_head
    wpe = std * jax.random.normal(next(it), (cfg.block_size, C), jnp.float32)

    wqkv, wpr, wfc, wmp = [], [], [], []
    for _ in range(L):
        wqkv.append(std * jax.random.normal(next(it), (C, 3 * C), jnp.float32))
        wpr.append(std_proj * jax.random.normal(next(it), (C, C), jnp.float32))
        wfc.append(std * jax.random.normal(next(it), (C, 4 * C), jnp.float32))
        wmp.append(std_proj * jax.random.normal(next(it), (4 * C, C), jnp.float32))
    wqkv = jnp.stack(wqkv)                        # [L, C, 3C]
    wpr = jnp.stack(wpr)                          # [L, C, C]
    wfc = jnp.stack(wfc)                          # [L, C, 4C]
    wmp = jnp.stack(wmp)                          # [L, 4C, C]

    # tied lm_head: pre-transpose ONCE and pad vocab to a 128-lane multiple
    Vp = ((V + LANE - 1) // LANE) * LANE
    lm_head_pad = jnp.zeros((C, Vp), jnp.float32).at[:, :V].set(wte.T)

    return dict(
        wte=wte, wpe=wpe,
        ln1g=jnp.ones((L, 1, C), jnp.float32), ln1b=jnp.zeros((L, 1, C), jnp.float32),
        wqkv=wqkv, bqkv=jnp.zeros((L, 1, 3 * C), jnp.float32),
        wpr_h=wpr.reshape(L, nh, hd, C),          # pre-split per head
        bpr=jnp.zeros((L, 1, C), jnp.float32),
        ln2g=jnp.ones((L, 1, C), jnp.float32), ln2b=jnp.zeros((L, 1, C), jnp.float32),
        wfc=wfc, bfc=jnp.zeros((L, 1, 4 * C), jnp.float32),
        wmp=wmp, bmp=jnp.zeros((L, 1, C), jnp.float32),
        lnf_g=jnp.ones((1, C), jnp.float32), lnf_b=jnp.zeros((1, C), jnp.float32),
        lm_head_pad=lm_head_pad,
    )


# ----------------------------- pure-JAX reference (verification) -------------

def _ref_forward(idx, params, cfg):
    def ln(x, g, b, eps=1e-5):
        mu = x.mean(-1, keepdims=True)
        var = ((x - mu) ** 2).mean(-1, keepdims=True)
        return (x - mu) * lax.rsqrt(var + eps) * g + b

    B, T = idx.shape
    C, nh, L = cfg.n_embd, cfg.n_head, cfg.n_layer
    hd = C // nh
    x = params["wte"][idx] + params["wpe"][:T][None]
    for l in range(L):
        h = ln(x, params["ln1g"][l, 0], params["ln1b"][l, 0])
        qkv = h @ params["wqkv"][l] + params["bqkv"][l, 0]
        q, k, v = jnp.split(qkv, 3, axis=-1)
        q = q.reshape(B, T, nh, hd).transpose(0, 2, 1, 3)
        k = k.reshape(B, T, nh, hd).transpose(0, 2, 1, 3)
        v = v.reshape(B, T, nh, hd).transpose(0, 2, 1, 3)
        s = jnp.einsum("bhqd,bhkd->bhqk", q, k) / math.sqrt(hd)
        mask = jnp.tril(jnp.ones((T, T), bool))
        s = jnp.where(mask, s, -1e30)
        p = jax.nn.softmax(s, axis=-1)
        y = jnp.einsum("bhqk,bhkd->bhqd", p, v).transpose(0, 2, 1, 3).reshape(B, T, C)
        wpr = params["wpr_h"][l].reshape(C, C)
        x = x + y @ wpr + params["bpr"][l, 0]
        h2 = ln(x, params["ln2g"][l, 0], params["ln2b"][l, 0])
        m = _gelu_tanh(h2 @ params["wfc"][l] + params["bfc"][l, 0])
        x = x + m @ params["wmp"][l] + params["bmp"][l, 0]
    x = ln(x, params["lnf_g"][0], params["lnf_b"][0])
    return x @ params["wte"].T


# ----------------------------- main ------------------------------------------

if __name__ == "__main__":
    cfg = Config()
    key = jax.random.PRNGKey(0)
    pkey, ikey = jax.random.split(key)

    params = init_params(cfg, pkey)

    B, T = 2, 8
    idx = jax.random.randint(ikey, (B, T), 0, cfg.vocab_size, dtype=jnp.int32)

    logits = jax.block_until_ready(gpt_forward(idx, params, cfg))
    ref = _ref_forward(idx, params, cfg)

    assert logits.shape == (B, T, cfg.vocab_size)
    max_err = jnp.max(jnp.abs(logits - ref))
    assert jnp.allclose(logits, ref, atol=2e-3, rtol=2e-3), f"max err {max_err}"

    # TODO(synk): cross-entropy loss (targets path) and the sampling generate()
    # loop are host-side glue and are not kernelized; only the logits forward
    # pass is reproduced.
    print("KERNEL_OK")
</pallas_src>

<mosaic_0001>
module attributes {stable_mosaic.version = 11 : i64} {
  func.func @gpt_kernel(%arg0: memref<16x32xf32, #tpu.memory_space<vmem>>, %arg1: memref<16x16xf32, #tpu.memory_space<vmem>>, %arg2: memref<2x1x32xf32, #tpu.memory_space<vmem>>, %arg3: memref<2x1x32xf32, #tpu.memory_space<vmem>>, %arg4: memref<2x32x96xf32, #tpu.memory_space<vmem>>, %arg5: memref<2x1x96xf32, #tpu.memory_space<vmem>>, %arg6: memref<2x2x16x32xf32, #tpu.memory_space<vmem>>, %arg7: memref<2x1x32xf32, #tpu.memory_space<vmem>>, %arg8: memref<2x1x32xf32, #tpu.memory_space<vmem>>, %arg9: memref<2x1x32xf32, #tpu.memory_space<vmem>>, %arg10: memref<2x32x128xf32, #tpu.memory_space<vmem>>, %arg11: memref<2x1x128xf32, #tpu.memory_space<vmem>>, %arg12: memref<2x128x32xf32, #tpu.memory_space<vmem>>, %arg13: memref<2x1x32xf32, #tpu.memory_space<vmem>>, %arg14: memref<1x32xf32, #tpu.memory_space<vmem>>, %arg15: memref<1x32xf32, #tpu.memory_space<vmem>>, %arg16: memref<32x128xf32, #tpu.memory_space<vmem>>, %arg17: memref<16x128xf32, #tpu.memory_space<vmem>>) attributes {dimension_semantics = [], scalar_prefetch = 0 : i64, scratch_operands = 0 : i64, tpu.core_type = #tpu.core_type<tc>} {
    %c0 = arith.constant 0 : index
    %c0_0 = arith.constant 0 : index
    %0 = vector.load %arg0[%c0, %c0_0] : memref<16x32xf32, #tpu.memory_space<vmem>>, vector<16x32xf32>
    %c0_1 = arith.constant 0 : index
    %c0_2 = arith.constant 0 : index
    %1 = vector.load %arg1[%c0_1, %c0_2] : memref<16x16xf32, #tpu.memory_space<vmem>>, vector<16x16xf32>
    %c0_3 = arith.constant 0 : index
    %c0_4 = arith.constant 0 : index
    %c0_5 = arith.constant 0 : index
    %2 = vector.load %arg2[%c0_3, %c0_4, %c0_5] : memref<2x1x32xf32, #tpu.memory_space<vmem>>, vector<1x1x32xf32>
    %3 = vector.shape_cast %2 : vector<1x1x32xf32> to vector<1x32xf32>
    %c0_6 = arith.constant 0 : index
    %c0_7 = arith.constant 0 : index
    %c0_8 = arith.constant 0 : index
    %4 = vector.load %arg3[%c0_6, %c0_7, %c0_8] : memref<2x1x32xf32, #tpu.memory_space<vmem>>, vector<1x1x32xf32>
    %5 = vector.shape_cast %4 : vector<1x1x32xf32> to vector<1x32xf32>
    %cst = arith.constant dense<0.000000e+00> : vector<16xf32>
    %6 = vector.multi_reduction <add>, %0, %cst [1] : vector<16x32xf32> to vector<16xf32>
    %7 = vector.shape_cast %6 : vector<16xf32> to vector<16x1xf32>
    %cst_9 = arith.constant 3.200000e+01 : f32
    %8 = vector.broadcast %cst_9 : f32 to vector<16x1xf32>
    %9 = arith.divf %7, %8 : vector<16x1xf32>
    %10 = vector.broadcast %9 : vector<16x1xf32> to vector<16x32xf32>
    %11 = arith.subf %0, %10 : vector<16x32xf32>
    %12 = arith.mulf %11, %11 : vector<16x32xf32>
    %cst_10 = arith.constant dense<0.000000e+00> : vector<16xf32>
    %13 = vector.multi_reduction <add>, %12, %cst_10 [1] : vector<16x32xf32> to vector<16xf32>
    %14 = vector.shape_cast %13 : vector<16xf32> to vector<16x1xf32>
    %cst_11 = arith.constant 3.200000e+01 : f32
    %15 = vector.broadcast %cst_11 : f32 to vector<16x1xf32>
    %16 = arith.divf %14, %15 : vector<16x1xf32>
    %cst_12 = arith.constant 9.99999974E-6 : f32
    %17 = vector.broadcast %cst_12 : f32 to vector<16x1xf32>
    %18 = arith.addf %16, %17 : vector<16x1xf32>
    %19 = math.rsqrt %18 : vector<16x1xf32>
    %20 = vector.broadcast %19 : vector<16x1xf32> to vector<16x32xf32>
    %21 = arith.mulf %11, %20 : vector<16x32xf32>
    %22 = vector.broadcast %3 : vector<1x32xf32> to vector<16x32xf32>
    %23 = arith.mulf %21, %22 : vector<16x32xf32>
    %24 = vector.broadcast %5 : vector<1x32xf32> to vector<16x32xf32>
    %25 = arith.addf %23, %24 : vector<16x32xf32>
    %c0_13 = arith.constant 0 : index
    %c0_14 = arith.constant 0 : index
    %c0_15 = arith.constant 0 : index
    %26 = vector.load %arg4[%c0_13, %c0_14, %c0_15] : memref<2x32x96xf32, #tpu.memory_space<vmem>>, vector<1x32x96xf32>
    %27 = vector.shape_cast %26 : vector<1x32x96xf32> to vector<32x96xf32>
    %cst_16 = arith.constant dense<0.000000e+00> : vector<16x96xf32>
    %28 = tpu.matmul %25, %27, %cst_16 {dimension_numbers = #tpu.dot_dimension_numbers<[1], [0], [0], [1], [0, 0, 1, 1], [], []>} : vector<16x32xf32>, vector<32x96xf32>, vector<16x96xf32> -> vector<16x96xf32>
    %c0_17 = arith.constant 0 : index
    %c0_18 = arith.constant 0 : index
    %c0_19 = arith.constant 0 : index
    %29 = vector.load %arg5[%c0_17, %c0_18, %c0_19] : memref<2x1x96xf32, #tpu.memory_space<vmem>>, vector<1x1x96xf32>
    %30 = vector.shape_cast %29 : vector<1x1x96xf32> to vector<1x96xf32>
    %31 = vector.broadcast %30 : vector<1x96xf32> to vector<16x96xf32>
    %32 = arith.addf %28, %31 : vector<16x96xf32>
    %cst_20 = arith.constant 0.000000e+00 : f32
    %33 = vector.broadcast %cst_20 : f32 to vector<16x32xf32>
    %34 = vector.extract_strided_slice %32 {offsets = [0, 0], sizes = [16, 16], strides = [1, 1]} : vector<16x96xf32> to vector<16x16xf32>
    %35 = vector.extract_strided_slice %32 {offsets = [0, 32], sizes = [16, 16], strides = [1, 1]} : vector<16x96xf32> to vector<16x16xf32>
    %36 = vector.extract_strided_slice %32 {offsets = [0, 64], sizes = [16, 16], strides = [1, 1]} : vector<16x96xf32> to vector<16x16xf32>
    %cst_21 = arith.constant dense<0.000000e+00> : vector<16x16xf32>
    %37 = tpu.matmul %34, %35, %cst_21 {dimension_numbers = #tpu.dot_dimension_numbers<[1], [1], [0], [0], [0, 0, 1, 0], [], []>} : vector<16x16xf32>, vector<16x16xf32>, vector<16x16xf32> -> vector<16x16xf32>
    %cst_22 = arith.constant 2.500000e-01 : f32
    %38 = vector.broadcast %cst_22 : f32 to vector<16x16xf32>
    %39 = arith.mulf %37, %38 : vector<16x16xf32>
    %40 = arith.addf %39, %1 : vector<16x16xf32>
    %cst_23 = arith.constant dense<0xFF800000> : vector<16xf32>
    %41 = vector.multi_reduction <maximumf>, %40, %cst_23 [1] : vector<16x16xf32> to vector<16xf32>
    %42 = vector.shape_cast %41 : vector<16xf32> to vector<16x1xf32>
    %43 = vector.broadcast %42 : vector<16x1xf32> to vector<16x16xf32>
    %44 = arith.subf %40, %43 : vector<16x16xf32>
    %45 = math.exp %44 : vector<16x16xf32>
    %cst_24 = arith.constant dense<0.000000e+00> : vector<16xf32>
    %46 = vector.multi_reduction <add>, %45, %cst_24 [1] : vector<16x16xf32> to vector<16xf32>
    %47 = vector.shape_cast %46 : vector<16xf32> to vector<16x1xf32>
    %48 = tpu.reciprocal %47 {approx = true} : vector<16x1xf32> -> vector<16x1xf32>
    %49 = vector.broadcast %48 : vector<16x1xf32> to vector<16x16xf32>
    %50 = arith.mulf %45, %49 : vector<16x16xf32>
    %cst_25 = arith.constant dense<0.000000e+00> : vector<16x16xf32>
    %51 = tpu.matmul %50, %36, %cst_25 {dimension_numbers = #tpu.dot_dimension_numbers<[1], [0], [0], [1], [0, 0, 1, 1], [], []>} : vector<16x16xf32>, vector<16x16xf32>, vector<16x16xf32> -> vector<16x16xf32>
    %c0_26 = arith.constant 0 : index
    %c0_27 = arith.constant 0 : index
    %c0_28 = arith.constant 0 : index
    %c0_29 = arith.constant 0 : index
    %52 = vector.load %arg6[%c0_26, %c0_27, %c0_28, %c0_29] : memref<2x2x16x32xf32, #tpu.memory_space<vmem>>, vector<1x1x16x32xf32>
    %53 = vector.shape_cast %52 : vector<1x1x16x32xf32> to vector<16x32xf32>
    %cst_30 = arith.constant dense<0.000000e+00> : vector<16x32xf32>
    %54 = tpu.matmul %51, %53, %cst_30 {dimension_numbers = #tpu.dot_dimension_numbers<[1], [0], [0], [1], [0, 0, 1, 1], [], []>} : vector<16x16xf32>, vector<16x32xf32>, vector<16x32xf32> -> vector<16x32xf32>
    %55 = arith.addf %33, %54 : vector<16x32xf32>
    %56 = vector.extract_strided_slice %32 {offsets = [0, 16], sizes = [16, 16], strides = [1, 1]} : vector<16x96xf32> to vector<16x16xf32>
    %57 = vector.extract_strided_slice %32 {offsets = [0, 48], sizes = [16, 16], strides = [1, 1]} : vector<16x96xf32> to vector<16x16xf32>
    %58 = vector.extract_strided_slice %32 {offsets = [0, 80], sizes = [16, 16], strides = [1, 1]} : vector<16x96xf32> to vector<16x16xf32>
    %cst_31 = arith.constant dense<0.000000e+00> : vector<16x16xf32>
    %59 = tpu.matmul %56, %57, %cst_31 {dimension_numbers = #tpu.dot_dimension_numbers<[1], [1], [0], [0], [0, 0, 1, 0], [], []>} : vector<16x16xf32>, vector<16x16xf32>, vector<16x16xf32> -> vector<16x16xf32>
    %cst_32 = arith.constant 2.500000e-01 : f32
    %60 = vector.broadcast %cst_32 : f32 to vector<16x16xf32>
    %61 = arith.mulf %59, %60 : vector<16x16xf32>
    %62 = arith.addf %61, %1 : vector<16x16xf32>
    %cst_33 = arith.constant dense<0xFF800000> : vector<16xf32>
    %63 = vector.multi_reduction <maximumf>, %62, %cst_33 [1] : vector<16x16xf32> to vector<16xf32>
    %64 = vector.shape_cast %63 : vector<16xf32> to vector<16x1xf32>
    %65 = vector.broadcast %64 : vector<16x1xf32> to vector<16x16xf32>
    %66 = arith.subf %62, %65 : vector<16x16xf32>
    %67 = math.exp %66 : vector<16x16xf32>
    %cst_34 = arith.constant dense<0.000000e+00> : vector<16xf32>
    %68 = vector.multi_reduction <add>, %67, %cst_34 [1] : vector<16x16xf32> to vector<16xf32>
    %69 = vector.shape_cast %68 : vector<16xf32> to vector<16x1xf32>
    %70 = tpu.reciprocal %69 {approx = true} : vector<16x1xf32> -> vector<16x1xf32>
    %71 = vector.broadcast %70 : vector<16x1xf32> to vector<16x16xf32>
    %72 = arith.mulf %67, %71 : vector<16x16xf32>
    %cst_35 = arith.constant dense<0.000000e+00> : vector<16x16xf32>
    %73 = tpu.matmul %72, %58, %cst_35 {dimension_numbers = #tpu.dot_dimension_numbers<[1], [0], [0], [1], [0, 0, 1, 1], [], []>} : vector<16x16xf32>, vector<16x16xf32>, vector<16x16xf32> -> vector<16x16xf32>
    %c0_36 = arith.constant 0 : index
    %c1 = arith.constant 1 : index
    %c0_37 = arith.constant 0 : index
    %c0_38 = arith.constant 0 : index
    %74 = vector.load %arg6[%c0_36, %c1, %c0_37, %c0_38] : memref<2x2x16x32xf32, #tpu.memory_space<vmem>>, vector<1x1x16x32xf32>
    %75 = vector.shape_cast %74 : vector<1x1x16x32xf32> to vector<16x32xf32>
    %cst_39 = arith.constant dense<0.000000e+00> : vector<16x32xf32>
    %76 = tpu.matmul %73, %75, %cst_39 {dimension_numbers = #tpu.dot_dimension_numbers<[1], [0], [0], [1], [0, 0, 1, 1], [], []>} : vector<16x16xf32>, vector<16x32xf32>, vector<16x32xf32> -> vector<16x32xf32>
    %77 = arith.addf %55, %76 : vector<16x32xf32>
    %78 = arith.addf %0, %77 : vector<16x32xf32>
    %c0_40 = arith.constant 0 : index
    %c0_41 = arith.constant 0 : index
    %c0_42 = arith.constant 0 : index
    %79 = vector.load %arg7[%c0_40, %c0_41, %c0_42] : memref<2x1x32xf32, #tpu.memory_space<vmem>>, vector<1x1x32xf32>
    %80 = vector.shape_cast %79 : vector<1x1x32xf32> to vector<1x32xf32>
    %81 = vector.broadcast %80 : vector<1x32xf32> to vector<16x32xf32>
    %82 = arith.addf %78, %81 : vector<16x32xf32>
    %c0_43 = arith.constant 0 : index
    %c0_44 = arith.constant 0 : index
    %c0_45 = arith.constant 0 : index
    %83 = vector.load %arg8[%c0_43, %c0_44, %c0_45] : memref<2x1x32xf32, #tpu.memory_space<vmem>>, vector<1x1x32xf32>
    %84 = vector.shape_cast %83 : vector<1x1x32xf32> to vector<1x32xf32>
    %c0_46 = arith.constant 0 : index
    %c0_47 = arith.constant 0 : index
    %c0_48 = arith.constant 0 : index
    %85 = vector.load %arg9[%c0_46, %c0_47, %c0_48] : memref<2x1x32xf32, #tpu.memory_space<vmem>>, vector<1x1x32xf32>
    %86 = vector.shape_cast %85 : vector<1x1x32xf32> to vector<1x32xf32>
    %cst_49 = arith.constant dense<0.000000e+00> : vector<16xf32>
    %87 = vector.multi_reduction <add>, %82, %cst_49 [1] : vector<16x32xf32> to vector<16xf32>
    %88 = vector.shape_cast %87 : vector<16xf32> to vector<16x1xf32>
    %cst_50 = arith.constant 3.200000e+01 : f32
    %89 = vector.broadcast %cst_50 : f32 to vector<16x1xf32>
    %90 = arith.divf %88, %89 : vector<16x1xf32>
    %91 = vector.broadcast %90 : vector<16x1xf32> to vector<16x32xf32>
    %92 = arith.subf %82, %91 : vector<16x32xf32>
    %93 = arith.mulf %92, %92 : vector<16x32xf32>
    %cst_51 = arith.constant dense<0.000000e+00> : vector<16xf32>
    %94 = vector.multi_reduction <add>, %93, %cst_51 [1] : vector<16x32xf32> to vector<16xf32>
    %95 = vector.shape_cast %94 : vector<16xf32> to vector<16x1xf32>
    %cst_52 = arith.constant 3.200000e+01 : f32
    %96 = vector.broadcast %cst_52 : f32 to vector<16x1xf32>
    %97 = arith.divf %95, %96 : vector<16x1xf32>
    %cst_53 = arith.constant 9.99999974E-6 : f32
    %98 = vector.broadcast %cst_53 : f32 to vector<16x1xf32>
    %99 = arith.addf %97, %98 : vector<16x1xf32>
    %100 = math.rsqrt %99 : vector<16x1xf32>
    %101 = vector.broadcast %100 : vector<16x1xf32> to vector<16x32xf32>
    %102 = arith.mulf %92, %101 : vector<16x32xf32>
    %103 = vector.broadcast %84 : vector<1x32xf32> to vector<16x32xf32>
    %104 = arith.mulf %102, %103 : vector<16x32xf32>
    %105 = vector.broadcast %86 : vector<1x32xf32> to vector<16x32xf32>
    %106 = arith.addf %104, %105 : vector<16x32xf32>
    %c0_54 = arith.constant 0 : index
    %c0_55 = arith.constant 0 : index
    %c0_56 = arith.constant 0 : index
    %107 = vector.load %arg10[%c0_54, %c0_55, %c0_56] : memref<2x32x128xf32, #tpu.memory_space<vmem>>, vector<1x32x128xf32>
    %108 = vector.shape_cast %107 : vector<1x32x128xf32> to vector<32x128xf32>
    %cst_57 = arith.constant dense<0.000000e+00> : vector<16x128xf32>
    %109 = tpu.matmul %106, %108, %cst_57 {dimension_numbers = #tpu.dot_dimension_numbers<[1], [0], [0], [1], [0, 0, 1, 1], [], []>} : vector<16x32xf32>, vector<32x128xf32>, vector<16x128xf32> -> vector<16x128xf32>
    %c0_58 = arith.constant 0 : index
    %c0_59 = arith.constant 0 : index
    %c0_60 = arith.constant 0 : index
    %110 = vector.load %arg11[%c0_58, %c0_59, %c0_60] : memref<2x1x128xf32, #tpu.memory_space<vmem>>, vector<1x1x128xf32>
    %111 = vector.shape_cast %110 : vector<1x1x128xf32> to vector<1x128xf32>
    %112 = vector.broadcast %111 : vector<1x128xf32> to vector<16x128xf32>
    %113 = arith.addf %109, %112 : vector<16x128xf32>
    %cst_61 = arith.constant 5.000000e-01 : f32
    %114 = vector.broadcast %cst_61 : f32 to vector<16x128xf32>
    %115 = arith.mulf %114, %113 : vector<16x128xf32>
    %cst_62 = arith.constant 4.471500e-02 : f32
    %116 = vector.broadcast %cst_62 : f32 to vector<16x128xf32>
    %117 = arith.mulf %116, %113 : vector<16x128xf32>
    %118 = arith.mulf %117, %113 : vector<16x128xf32>
    %119 = arith.mulf %118, %113 : vector<16x128xf32>
    %120 = arith.addf %113, %119 : vector<16x128xf32>
    %cst_63 = arith.constant 0.797884583 : f32
    %121 = vector.broadcast %cst_63 : f32 to vector<16x128xf32>
    %122 = arith.mulf %121, %120 : vector<16x128xf32>
    %123 = math.tanh %122 : vector<16x128xf32>
    %cst_64 = arith.constant 1.000000e+00 : f32
    %124 = vector.broadcast %cst_64 : f32 to vector<16x128xf32>
    %125 = arith.addf %124, %123 : vector<16x128xf32>
    %126 = arith.mulf %115, %125 : vector<16x128xf32>
    %c0_65 = arith.constant 0 : index
    %c0_66 = arith.constant 0 : index
    %c0_67 = arith.constant 0 : index
    %127 = vector.load %arg12[%c0_65, %c0_66, %c0_67] : memref<2x128x32xf32, #tpu.memory_space<vmem>>, vector<1x128x32xf32>
    %128 = vector.shape_cast %127 : vector<1x128x32xf32> to vector<128x32xf32>
    %cst_68 = arith.constant dense<0.000000e+00> : vector<16x32xf32>
    %129 = tpu.matmul %126, %128, %cst_68 {dimension_numbers = #tpu.dot_dimension_numbers<[1], [0], [0], [1], [0, 0, 1, 1], [], []>} : vector<16x128xf32>, vector<128x32xf32>, vector<16x32xf32> -> vector<16x32xf32>
    %130 = arith.addf %82, %129 : vector<16x32xf32>
    %c0_69 = arith.constant 0 : index
    %c0_70 = arith.constant 0 : index
    %c0_71 = arith.constant 0 : index
    %131 = vector.load %arg13[%c0_69, %c0_70, %c0_71] : memref<2x1x32xf32, #tpu.memory_space<vmem>>, vector<1x1x32xf32>
    %132 = vector.shape_cast %131 : vector<1x1x32xf32> to vector<1x32xf32>
    %133 = vector.broadcast %132 : vector<1x32xf32> to vector<16x32xf32>
    %134 = arith.addf %130, %133 : vector<16x32xf32>
    %c1_72 = arith.constant 1 : index
    %c0_73 = arith.constant 0 : index
    %c0_74 = arith.constant 0 : index
    %135 = vector.load %arg2[%c1_72, %c0_73, %c0_74] : memref<2x1x32xf32, #tpu.memory_space<vmem>>, vector<1x1x32xf32>
    %136 = vector.shape_cast %135 : vector<1x1x32xf32> to vector<1x32xf32>
    %c1_75 = arith.constant 1 : index
    %c0_76 = arith.constant 0 : index
    %c0_77 = arith.constant 0 : index
    %137 = vector.load %arg3[%c1_75, %c0_76, %c0_77] : memref<2x1x32xf32, #tpu.memory_space<vmem>>, vector<1x1x32xf32>
    %138 = vector.shape_cast %137 : vector<1x1x32xf32> to vector<1x32xf32>
    %cst_78 = arith.constant dense<0.000000e+00> : vector<16xf32>
    %139 = vector.multi_reduction <add>, %134, %cst_78 [1] : vector<16x32xf32> to vector<16xf32>
    %140 = vector.shape_cast %139 : vector<16xf32> to vector<16x1xf32>
    %cst_79 = arith.constant 3.200000e+01 : f32
    %141 = vector.broadcast %cst_79 : f32 to vector<16x1xf32>
    %142 = arith.divf %140, %141 : vector<16x1xf32>
    %143 = vector.broadcast %142 : vector<16x1xf32> to vector<16x32xf32>
    %144 = arith.subf %134, %143 : vector<16x32xf32>
    %145 = arith.mulf %144, %144 : vector<16x32xf32>
    %cst_80 = arith.constant dense<0.000000e+00> : vector<16xf32>
    %146 = vector.multi_reduction <add>, %145, %cst_80 [1] : vector<16x32xf32> to vector<16xf32>
    %147 = vector.shape_cast %146 : vector<16xf32> to vector<16x1xf32>
    %cst_81 = arith.constant 3.200000e+01 : f32
    %148 = vector.broadcast %cst_81 : f32 to vector<16x1xf32>
    %149 = arith.divf %147, %148 : vector<16x1xf32>
    %cst_82 = arith.constant 9.99999974E-6 : f32
    %150 = vector.broadcast %cst_82 : f32 to vector<16x1xf32>
    %151 = arith.addf %149, %150 : vector<16x1xf32>
    %152 = math.rsqrt %151 : vector<16x1xf32>
    %153 = vector.broadcast %152 : vector<16x1xf32> to vector<16x32xf32>
    %154 = arith.mulf %144, %153 : vector<16x32xf32>
    %155 = vector.broadcast %136 : vector<1x32xf32> to vector<16x32xf32>
    %156 = arith.mulf %154, %155 : vector<16x32xf32>
    %157 = vector.broadcast %138 : vector<1x32xf32> to vector<16x32xf32>
    %158 = arith.addf %156, %157 : vector<16x32xf32>
    %c1_83 = arith.constant 1 : index
    %c0_84 = arith.constant 0 : index
    %c0_85 = arith.constant 0 : index
    %159 = vector.load %arg4[%c1_83, %c0_84, %c0_85] : memref<2x32x96xf32, #tpu.memory_space<vmem>>, vector<1x32x96xf32>
    %160 = vector.shape_cast %159 : vector<1x32x96xf32> to vector<32x96xf32>
    %cst_86 = arith.constant dense<0.000000e+00> : vector<16x96xf32>
    %161 = tpu.matmul %158, %160, %cst_86 {dimension_numbers = #tpu.dot_dimension_numbers<[1], [0], [0], [1], [0, 0, 1, 1], [], []>} : vector<16x32xf32>, vector<32x96xf32>, vector<16x96xf32> -> vector<16x96xf32>
    %c1_87 = arith.constant 1 : index
    %c0_88 = arith.constant 0 : index
    %c0_89 = arith.constant 0 : index
    %162 = vector.load %arg5[%c1_87, %c0_88, %c0_89] : memref<2x1x96xf32, #tpu.memory_space<vmem>>, vector<1x1x96xf32>
    %163 = vector.shape_cast %162 : vector<1x1x96xf32> to vector<1x96xf32>
    %164 = vector.broadcast %163 : vector<1x96xf32> to vector<16x96xf32>
    %165 = arith.addf %161, %164 : vector<16x96xf32>
    %cst_90 = arith.constant 0.000000e+00 : f32
    %166 = vector.broadcast %cst_90 : f32 to vector<16x32xf32>
    %167 = vector.extract_strided_slice %165 {offsets = [0, 0], sizes = [16, 16], strides = [1, 1]} : vector<16x96xf32> to vector<16x16xf32>
    %168 = vector.extract_strided_slice %165 {offsets = [0, 32], sizes = [16, 16], strides = [1, 1]} : vector<16x96xf32> to vector<16x16xf32>
    %169 = vector.extract_strided_slice %165 {offsets = [0, 64], sizes = [16, 16], strides = [1, 1]} : vector<16x96xf32> to vector<16x16xf32>
    %cst_91 = arith.constant dense<0.000000e+00> : vector<16x16xf32>
    %170 = tpu.matmul %167, %168, %cst_91 {dimension_numbers = #tpu.dot_dimension_numbers<[1], [1], [0], [0], [0, 0, 1, 0], [], []>} : vector<16x16xf32>, vector<16x16xf32>, vector<16x16xf32> -> vector<16x16xf32>
    %cst_92 = arith.constant 2.500000e-01 : f32
    %171 = vector.broadcast %cst_92 : f32 to vector<16x16xf32>
    %172 = arith.mulf %170, %171 : vector<16x16xf32>
    %173 = arith.addf %172, %1 : vector<16x16xf32>
    %cst_93 = arith.constant dense<0xFF800000> : vector<16xf32>
    %174 = vector.multi_reduction <maximumf>, %173, %cst_93 [1] : vector<16x16xf32> to vector<16xf32>
    %175 = vector.shape_cast %174 : vector<16xf32> to vector<16x1xf32>
    %176 = vector.broadcast %175 : vector<16x1xf32> to vector<16x16xf32>
    %177 = arith.subf %173, %176 : vector<16x16xf32>
    %178 = math.exp %177 : vector<16x16xf32>
    %cst_94 = arith.constant dense<0.000000e+00> : vector<16xf32>
    %179 = vector.multi_reduction <add>, %178, %cst_94 [1] : vector<16x16xf32> to vector<16xf32>
    %180 = vector.shape_cast %179 : vector<16xf32> to vector<16x1xf32>
    %181 = tpu.reciprocal %180 {approx = true} : vector<16x1xf32> -> vector<16x1xf32>
    %182 = vector.broadcast %181 : vector<16x1xf32> to vector<16x16xf32>
    %183 = arith.mulf %178, %182 : vector<16x16xf32>
    %cst_95 = arith.constant dense<0.000000e+00> : vector<16x16xf32>
    %184 = tpu.matmul %183, %169, %cst_95 {dimension_numbers = #tpu.dot_dimension_numbers<[1], [0], [0], [1], [0, 0, 1, 1], [], []>} : vector<16x16xf32>, vector<16x16xf32>, vector<16x16xf32> -> vector<16x16xf32>
    %c1_96 = arith.constant 1 : index
    %c0_97 = arith.constant 0 : index
    %c0_98 = arith.constant 0 : index
    %c0_99 = arith.constant 0 : index
    %185 = vector.load %arg6[%c1_96, %c0_97, %c0_98, %c0_99] : memref<2x2x16x32xf32, #tpu.memory_space<vmem>>, vector<1x1x16x32xf32>
    %186 = vector.shape_cast %185 : vector<1x1x16x32xf32> to vector<16x32xf32>
    %cst_100 = arith.constant dense<0.000000e+00> : vector<16x32xf32>
    %187 = tpu.matmul %184, %186, %cst_100 {dimension_numbers = #tpu.dot_dimension_numbers<[1], [0], [0], [1], [0, 0, 1, 1], [], []>} : vector<16x16xf32>, vector<16x32xf32>, vector<16x32xf32> -> vector<16x32xf32>
    %188 = arith.addf %166, %187 : vector<16x32xf32>
    %189 = vector.extract_strided_slice %165 {offsets = [0, 16], sizes = [16, 16], strides = [1, 1]} : vector<16x96xf32> to vector<16x16xf32>
    %190 = vector.extract_strided_slice %165 {offsets = [0, 48], sizes = [16, 16], strides = [1, 1]} : vector<16x96xf32> to vector<16x16xf32>
    %191 = vector.extract_strided_slice %165 {offsets = [0, 80], sizes = [16, 16], strides = [1, 1]} : vector<16x96xf32> to vector<16x16xf32>
    %cst_101 = arith.constant dense<0.000000e+00> : vector<16x16xf32>
    %192 = tpu.matmul %189, %190, %cst_101 {dimension_numbers = #tpu.dot_dimension_numbers<[1], [1], [0], [0], [0, 0, 1, 0], [], []>} : vector<16x16xf32>, vector<16x16xf32>, vector<16x16xf32> -> vector<16x16xf32>
    %cst_102 = arith.constant 2.500000e-01 : f32
    %193 = vector.broadcast %cst_102 : f32 to vector<16x16xf32>
    %194 = arith.mulf %192, %193 : vector<16x16xf32>
    %195 = arith.addf %194, %1 : vector<16x16xf32>
    %cst_103 = arith.constant dense<0xFF800000> : vector<16xf32>
    %196 = vector.multi_reduction <maximumf>, %195, %cst_103 [1] : vector<16x16xf32> to vector<16xf32>
    %197 = vector.shape_cast %196 : vector<16xf32> to vector<16x1xf32>
    %198 = vector.broadcast %197 : vector<16x1xf32> to vector<16x16xf32>
    %199 = arith.subf %195, %198 : vector<16x16xf32>
    %200 = math.exp %199 : vector<16x16xf32>
    %cst_104 = arith.constant dense<0.000000e+00> : vector<16xf32>
    %201 = vector.multi_reduction <add>, %200, %cst_104 [1] : vector<16x16xf32> to vector<16xf32>
    %202 = vector.shape_cast %201 : vector<16xf32> to vector<16x1xf32>
    %203 = tpu.reciprocal %202 {approx = true} : vector<16x1xf32> -> vector<16x1xf32>
    %204 = vector.broadcast %203 : vector<16x1xf32> to vector<16x16xf32>
    %205 = arith.mulf %200, %204 : vector<16x16xf32>
    %cst_105 = arith.constant dense<0.000000e+00> : vector<16x16xf32>
    %206 = tpu.matmul %205, %191, %cst_105 {dimension_numbers = #tpu.dot_dimension_numbers<[1], [0], [0], [1], [0, 0, 1, 1], [], []>} : vector<16x16xf32>, vector<16x16xf32>, vector<16x16xf32> -> vector<16x16xf32>
    %c1_106 = arith.constant 1 : index
    %c1_107 = arith.constant 1 : index
    %c0_108 = arith.constant 0 : index
    %c0_109 = arith.constant 0 : index
    %207 = vector.load %arg6[%c1_106, %c1_107, %c0_108, %c0_109] : memref<2x2x16x32xf32, #tpu.memory_space<vmem>>, vector<1x1x16x32xf32>
    %208 = vector.shape_cast %207 : vector<1x1x16x32xf32> to vector<16x32xf32>
    %cst_110 = arith.constant dense<0.000000e+00> : vector<16x32xf32>
    %209 = tpu.matmul %206, %208, %cst_110 {dimension_numbers = #tpu.dot_dimension_numbers<[1], [0], [0], [1], [0, 0, 1, 1], [], []>} : vector<16x16xf32>, vector<16x32xf32>, vector<16x32xf32> -> vector<16x32xf32>
    %210 = arith.addf %188, %209 : vector<16x32xf32>
    %211 = arith.addf %134, %210 : vector<16x32xf32>
    %c1_111 = arith.constant 1 : index
    %c0_112 = arith.constant 0 : index
    %c0_113 = arith.constant 0 : index
    %212 = vector.load %arg7[%c1_111, %c0_112, %c0_113] : memref<2x1x32xf32, #tpu.memory_space<vmem>>, vector<1x1x32xf32>
    %213 = vector.shape_cast %212 : vector<1x1x32xf32> to vector<1x32xf32>
    %214 = vector.broadcast %213 : vector<1x32xf32> to vector<16x32xf32>
    %215 = arith.addf %211, %214 : vector<16x32xf32>
    %c1_114 = arith.constant 1 : index
    %c0_115 = arith.constant 0 : index
    %c0_116 = arith.constant 0 : index
    %216 = vector.load %arg8[%c1_114, %c0_115, %c0_116] : memref<2x1x32xf32, #tpu.memory_space<vmem>>, vector<1x1x32xf32>
    %217 = vector.shape_cast %216 : vector<1x1x32xf32> to vector<1x32xf32>
    %c1_117 = arith.constant 1 : index
    %c0_118 = arith.constant 0 : index
    %c0_119 = arith.constant 0 : index
    %218 = vector.load %arg9[%c1_117, %c0_118, %c0_119] : memref<2x1x32xf32, #tpu.memory_space<vmem>>, vector<1x1x32xf32>
    %219 = vector.shape_cast %218 : vector<1x1x32xf32> to vector<1x32xf32>
    %cst_120 = arith.constant dense<0.000000e+00> : vector<16xf32>
    %220 = vector.multi_reduction <add>, %215, %cst_120 [1] : vector<16x32xf32> to vector<16xf32>
    %221 = vector.shape_cast %220 : vector<16xf32> to vector<16x1xf32>
    %cst_121 = arith.constant 3.200000e+01 : f32
    %222 = vector.broadcast %cst_121 : f32 to vector<16x1xf32>
    %223 = arith.divf %221, %222 : vector<16x1xf32>
    %224 = vector.broadcast %223 : vector<16x1xf32> to vector<16x32xf32>
    %225 = arith.subf %215, %224 : vector<16x32xf32>
    %226 = arith.mulf %225, %225 : vector<16x32xf32>
    %cst_122 = arith.constant dense<0.000000e+00> : vector<16xf32>
    %227 = vector.multi_reduction <add>, %226, %cst_122 [1] : vector<16x32xf32> to vector<16xf32>
    %228 = vector.shape_cast %227 : vector<16xf32> to vector<16x1xf32>
    %cst_123 = arith.constant 3.200000e+01 : f32
    %229 = vector.broadcast %cst_123 : f32 to vector<16x1xf32>
    %230 = arith.divf %228, %229 : vector<16x1xf32>
    %cst_124 = arith.constant 9.99999974E-6 : f32
    %231 = vector.broadcast %cst_124 : f32 to vector<16x1xf32>
    %232 = arith.addf %230, %231 : vector<16x1xf32>
    %233 = math.rsqrt %232 : vector<16x1xf32>
    %234 = vector.broadcast %233 : vector<16x1xf32> to vector<16x32xf32>
    %235 = arith.mulf %225, %234 : vector<16x32xf32>
    %236 = vector.broadcast %217 : vector<1x32xf32> to vector<16x32xf32>
    %237 = arith.mulf %235, %236 : vector<16x32xf32>
    %238 = vector.broadcast %219 : vector<1x32xf32> to vector<16x32xf32>
    %239 = arith.addf %237, %238 : vector<16x32xf32>
    %c1_125 = arith.constant 1 : index
    %c0_126 = arith.constant 0 : index
    %c0_127 = arith.constant 0 : index
    %240 = vector.load %arg10[%c1_125, %c0_126, %c0_127] : memref<2x32x128xf32, #tpu.memory_space<vmem>>, vector<1x32x128xf32>
    %241 = vector.shape_cast %240 : vector<1x32x128xf32> to vector<32x128xf32>
    %cst_128 = arith.constant dense<0.000000e+00> : vector<16x128xf32>
    %242 = tpu.matmul %239, %241, %cst_128 {dimension_numbers = #tpu.dot_dimension_numbers<[1], [0], [0], [1], [0, 0, 1, 1], [], []>} : vector<16x32xf32>, vector<32x128xf32>, vector<16x128xf32> -> vector<16x128xf32>
    %c1_129 = arith.constant 1 : index
    %c0_130 = arith.constant 0 : index
    %c0_131 = arith.constant 0 : index
    %243 = vector.load %arg11[%c1_129, %c0_130, %c0_131] : memref<2x1x128xf32, #tpu.memory_space<vmem>>, vector<1x1x128xf32>
    %244 = vector.shape_cast %243 : vector<1x1x128xf32> to vector<1x128xf32>
    %245 = vector.broadcast %244 : vector<1x128xf32> to vector<16x128xf32>
    %246 = arith.addf %242, %245 : vector<16x128xf32>
    %cst_132 = arith.constant 5.000000e-01 : f32
    %247 = vector.broadcast %cst_132 : f32 to vector<16x128xf32>
    %248 = arith.mulf %247, %246 : vector<16x128xf32>
    %cst_133 = arith.constant 4.471500e-02 : f32
    %249 = vector.broadcast %cst_133 : f32 to vector<16x128xf32>
    %250 = arith.mulf %249, %246 : vector<16x128xf32>
    %251 = arith.mulf %250, %246 : vector<16x128xf32>
    %252 = arith.mulf %251, %246 : vector<16x128xf32>
    %253 = arith.addf %246, %252 : vector<16x128xf32>
    %cst_134 = arith.constant 0.797884583 : f32
    %254 = vector.broadcast %cst_134 : f32 to vector<16x128xf32>
    %255 = arith.mulf %254, %253 : vector<16x128xf32>
    %256 = math.tanh %255 : vector<16x128xf32>
    %cst_135 = arith.constant 1.000000e+00 : f32
    %257 = vector.broadcast %cst_135 : f32 to vector<16x128xf32>
    %258 = arith.addf %257, %256 : vector<16x128xf32>
    %259 = arith.mulf %248, %258 : vector<16x128xf32>
    %c1_136 = arith.constant 1 : index
    %c0_137 = arith.constant 0 : index
    %c0_138 = arith.constant 0 : index
    %260 = vector.load %arg12[%c1_136, %c0_137, %c0_138] : memref<2x128x32xf32, #tpu.memory_space<vmem>>, vector<1x128x32xf32>
    %261 = vector.shape_cast %260 : vector<1x128x32xf32> to vector<128x32xf32>
    %cst_139 = arith.constant dense<0.000000e+00> : vector<16x32xf32>
    %262 = tpu.matmul %259, %261, %cst_139 {dimension_numbers = #tpu.dot_dimension_numbers<[1], [0], [0], [1], [0, 0, 1, 1], [], []>} : vector<16x128xf32>, vector<128x32xf32>, vector<16x32xf32> -> vector<16x32xf32>
    %263 = arith.addf %215, %262 : vector<16x32xf32>
    %c1_140 = arith.constant 1 : index
    %c0_141 = arith.constant 0 : index
    %c0_142 = arith.constant 0 : index
    %264 = vector.load %arg13[%c1_140, %c0_141, %c0_142] : memref<2x1x32xf32, #tpu.memory_space<vmem>>, vector<1x1x32xf32>
    %265 = vector.shape_cast %264 : vector<1x1x32xf32> to vector<1x32xf32>
    %266 = vector.broadcast %265 : vector<1x32xf32> to vector<16x32xf32>
    %267 = arith.addf %263, %266 : vector<16x32xf32>
    %c0_143 = arith.constant 0 : index
    %c0_144 = arith.constant 0 : index
    %268 = vector.load %arg14[%c0_143, %c0_144] : memref<1x32xf32, #tpu.memory_space<vmem>>, vector<1x32xf32>
    %c0_145 = arith.constant 0 : index
    %c0_146 = arith.constant 0 : index
    %269 = vector.load %arg15[%c0_145, %c0_146] : memref<1x32xf32, #tpu.memory_space<vmem>>, vector<1x32xf32>
    %cst_147 = arith.constant dense<0.000000e+00> : vector<16xf32>
    %270 = vector.multi_reduction <add>, %267, %cst_147 [1] : vector<16x32xf32> to vector<16xf32>
    %271 = vector.shape_cast %270 : vector<16xf32> to vector<16x1xf32>
    %cst_148 = arith.constant 3.200000e+01 : f32
    %272 = vector.broadcast %cst_148 : f32 to vector<16x1xf32>
    %273 = arith.divf %271, %272 : vector<16x1xf32>
    %274 = vector.broadcast %273 : vector<16x1xf32> to vector<16x32xf32>
    %275 = arith.subf %267, %274 : vector<16x32xf32>
    %276 = arith.mulf %275, %275 : vector<16x32xf32>
    %cst_149 = arith.constant dense<0.000000e+00> : vector<16xf32>
    %277 = vector.multi_reduction <add>, %276, %cst_149 [1] : vector<16x32xf32> to vector<16xf32>
    %278 = vector.shape_cast %277 : vector<16xf32> to vector<16x1xf32>
    %cst_150 = arith.constant 3.200000e+01 : f32
    %279 = vector.broadcast %cst_150 : f32 to vector<16x1xf32>
    %280 = arith.divf %278, %279 : vector<16x1xf32>
    %cst_151 = arith.constant 9.99999974E-6 : f32
    %281 = vector.broadcast %cst_151 : f32 to vector<16x1xf32>
    %282 = arith.addf %280, %281 : vector<16x1xf32>
    %283 = math.rsqrt %282 : vector<16x1xf32>
    %284 = vector.broadcast %283 : vector<16x1xf32> to vector<16x32xf32>
    %285 = arith.mulf %275, %284 : vector<16x32xf32>
    %286 = vector.broadcast %268 : vector<1x32xf32> to vector<16x32xf32>
    %287 = arith.mulf %285, %286 : vector<16x32xf32>
    %288 = vector.broadcast %269 : vector<1x32xf32> to vector<16x32xf32>
    %289 = arith.addf %287, %288 : vector<16x32xf32>
    %c0_152 = arith.constant 0 : index
    %c0_153 = arith.constant 0 : index
    %290 = vector.load %arg16[%c0_152, %c0_153] : memref<32x128xf32, #tpu.memory_space<vmem>>, vector<32x128xf32>
    %cst_154 = arith.constant dense<0.000000e+00> : vector<16x128xf32>
    %291 = tpu.matmul %289, %290, %cst_154 {dimension_numbers = #tpu.dot_dimension_numbers<[1], [0], [0], [1], [0, 0, 1, 1], [], []>} : vector<16x32xf32>, vector<32x128xf32>, vector<16x128xf32> -> vector<16x128xf32>
    %c0_155 = arith.constant 0 : index
    %c0_156 = arith.constant 0 : index
    %292 = vector.load %arg17[%c0_155, %c0_156] : memref<16x128xf32, #tpu.memory_space<vmem>>, vector<16x128xf32>
    tpu.vector_store %arg17[%c0_155, %c0_156], %291 {strides = array<i32>} : memref<16x128xf32, #tpu.memory_space<vmem>>, vector<16x128xf32>,
    return
  }
}

</mosaic_0001>

<bundles_post_ra>
// kernel: tpu_custom_call.1
= control target key start
LH: loop header
LB: loop body
LE: loop exit
PB: predicated region body
PF: predicated region fallthrough
CT: control target
= control target key end

     0   :  { %s1966_s0 = inlined_call_operand.vmem [shape: f32[16,32], index: 0, kind: input, shape index: {}]   ;;  %s1967_s1 = inlined_call_operand.vmem [shape: f32[16,16], index: 1, kind: input, shape index: {}]   ;;  %s1968_s2 = inlined_call_operand.vmem [shape: f32[2,1,32], index: 2, kind: input, shape index: {}]   ;;  %s1969_s3 = inlined_call_operand.vmem [shape: f32[2,1,32], index: 3, kind: input, shape index: {}]   ;;  %s1970_s4 = inlined_call_operand.vmem [shape: f32[2,32,96], index: 4, kind: input, shape index: {}]   ;;  %s1971_s5 = inlined_call_operand.vmem [shape: f32[2,1,96], index: 5, kind: input, shape index: {}]   ;;  %s1972_s6 = inlined_call_operand.vmem [shape: f32[2,2,16,32], index: 6, kind: input, shape index: {}]   ;;  %s1973_s7 = inlined_call_operand.vmem [shape: f32[2,1,32], index: 7, kind: input, shape index: {}]   ;;  %s1974_s8 = inlined_call_operand.vmem [shape: f32[2,1,32], index: 8, kind: input, shape index: {}]   ;;  %s1975_s9 = inlined_call_operand.vmem [shape: f32[2,1,32], index: 9, kind: input, shape index: {}]   ;;  %s1976_s10 = inlined_call_operand.vmem [shape: f32[2,32,128], index: 10, kind: input, shape index: {}]   ;;  %s1977_s11 = inlined_call_operand.vmem [shape: f32[2,1,128], index: 11, kind: input, shape index: {}]   ;;  %s1978_s12 = inlined_call_operand.vmem [shape: f32[2,128,32], index: 12, kind: input, shape index: {}]   ;;  %s1979_s13 = inlined_call_operand.vmem [shape: f32[2,1,32], index: 13, kind: input, shape index: {}]   ;;  %s1980_s14 = inlined_call_operand.vmem [shape: f32[1,32], index: 14, kind: input, shape index: {}]   ;;  %s1981_s15 = inlined_call_operand.vmem [shape: f32[1,32], index: 15, kind: input, shape index: {}]   ;;  %s1982_s16 = inlined_call_operand.vmem [shape: f32[32,128], index: 16, kind: input, shape index: {}]   ;;  %s1983_s17 = inlined_call_operand.hbm [shape: f32[16,128], index: 17, kind: output, shape index: {}]  }
   0x1   :  { %1986 = sst [smem:[#allocation5_spill]] %s1966_s0 }
   0x2   :  { %1987 = sst [smem:[#allocation6_spill]] %s1967_s1 }
   0x3   :  { %s1988_s26 = sld [smem:[#allocation5_spill]]  ;;  %vm63_vm0 = vcmask 261120  }
   0x9   :  { %v1550_v0 = vld [vmem:[%s1988_s26] sm:$0xff]  ;;  %v1557_v2 = vld [vmem:[%s1988_s26 + $0x8] sm:$0xff] }
   0xa   :  { %v64_v1 = vsel %vm63_vm0, %v1550_v0, 0.0  ;;  %v67_v3 = vsel %vm63_vm0, %v1557_v2, 0.0 }
   0xb   :  { %65 = vadd.xlane.f32.xlu0 %v64_v1 }
   0xc   :  { %22 = vsyncpa [#allocation3], 0  ;;  %v1448_v4 = vmov 32.0   ;;  %v128_v21 = vld [vmem:[%s1970_s4 + $0x18] sm:$0xff]  ;;  %v127_v22 = vld [vmem:[%s1970_s4 + $0x10] sm:$0xff]  ;;  %s1449_s28 = smov 80  }
   0xd   :  { %1360 = vrcp.f32 %v1448_v4  ;;  %151 = vmatpush.msra.mxu0 %v128_v21  ;;  %v126_v23 = vld [vmem:[%s1970_s4 + $0x8] sm:$0xff]  ;;  %v125_v24 = vld [vmem:[%s1970_s4] sm:$0xff]  ;;  %s1450_s29 = smov 96   ;;  %s1451_s0 = smov 112   ;;  %vm168_vm8 = vcmask 130048  }
   0xe   :  { %v1342_v39 = vld [vmem:[%s1968_s2] ss:$0 sm:$0xff]  ;;  %s1989_s19 = sld [smem:[#allocation6_spill]]  ;;  %s1452_s21 = smov 64  }
   0xf   :  { %152 = vmatpush.msra.mxu0 %v127_v22  ;;  %v1343_v43 = vld [vmem:[%s1969_s3] ss:$0 sm:$0xff]  ;;  %s1453_s22 = smov 48   ;;  %s1219_s20 = sshll.u32 %s1983_s17, 4  ;;  %s1220_s20 = int_to_ptr.hbm [resolvable:$true] %s1219_s20 }
  0x10   :  { %v1344_v53 = vld [vmem:[%s1971_s5] ss:$0 sm:$0xff] }
  0x11   :  { %153 = vmatpush.msra.mxu0 %v126_v23 }
  0x13   :  { %68 = vadd.xlane.f32.xlu0 %v67_v3  ;;  %v1361_v5 = vpop.eup %1360  ;;  %154 = vmatpush.msra.mxu0 %v125_v24 }
  0x14   :  { %v71_v6 = vmul.f32 32.0, %v1361_v5  ;;  %vm75_vm1 = vweird.f32 %v1361_v5  ;;  %v1613_v3 = vld [vmem:[%s1989_s19] sm:$0xff] }
  0x16   :  { %v72_v7 = vsub.f32 1.0, %v71_v6 }
  0x18   :  { %v73_v8 = vmul.f32 %v1361_v5, %v72_v7 }
  0x1a   :  { %v74_v9 = vadd.f32 %v1361_v5, %v73_v8  ;;  %v1620_v8 = vld [vmem:[%s1989_s19 + $0x8] sm:$0xff] }
  0x1c   :  { %v1561_v10 = vsel %vm75_vm1, %v1361_v5, %v74_v9 }
  0x7e   :  { %v66_v11 = vpop.xlane.xlu0 %65 }
  0x7f   :  { %v77_v12 = vmul.f32 %v1561_v10, %v66_v11 }
  0x81   :  { %v79_v13 = vsub.f32 %v1550_v0, %v77_v12 }
  0x83   :  { %v81_v14 = vmul.f32 %v79_v13, %v79_v13 }
  0x85   :  { %v83_v15 = vsel %vm63_vm0, %v81_v14, 0.0 }
  0x86   :  { %84 = vadd.xlane.f32.xlu1 %v83_v15  ;;  %v69_v16 = vpop.xlane.xlu0 %68 }
  0x87   :  { %v78_v17 = vmul.f32 %v1561_v10, %v69_v16 }
  0x89   :  { %v80_v18 = vsub.f32 %v1557_v2, %v78_v17 }
  0x8b   :  { %v82_v19 = vmul.f32 %v80_v18, %v80_v18 }
  0x8d   :  { %v86_v20 = vsel %vm63_vm0, %v82_v19, 0.0 }
  0x8e   :  { %87 = vadd.xlane.f32.xlu1 %v86_v20 }
  0xf9   :  { %v85_v25 = vpop.xlane.xlu1 %84 }
  0xfa   :  { %v89_v26 = vmul.f32 %v85_v25, %v1561_v10 }
  0xfc   :  { %v91_v27 = vadd.f32 1e-05, %v89_v26 }
  0xfe   :  { %1362 = vrsqrt.f32 %v91_v27  ;;  %vm99_vm3 = vweird.f32 %v91_v27 }
 0x101   :  { %v88_v28 = vpop.xlane.xlu1 %87 }
 0x102   :  { %v90_v29 = vmul.f32 %v88_v28, %v1561_v10 }
 0x104   :  { %v1363_v30 = vpop.eup %1362  ;;  %v92_v31 = vadd.f32 1e-05, %v90_v29 }
 0x105   :  { %v94_v32 = vmul.f32 %v1363_v30, %v91_v27  ;;  %vm100_vm2 = vweird.f32 %v1363_v30 }
 0x106   :  { %1364 = vrsqrt.f32 %v92_v31  ;;  %vm101_vm4 = vmor %vm99_vm3, %vm100_vm2  ;;  %vm109_vm6 = vweird.f32 %v92_v31 }
 0x107   :  { %v95_v33 = vmul.f32 %v1363_v30, %v94_v32 }
 0x109   :  { %v96_v34 = vmul.f32 0.5, %v95_v33 }
 0x10b   :  { %v97_v35 = vsub.f32 1.5, %v96_v34 }
 0x10c   :  { %v1365_v36 = vpop.eup %1364 }
 0x10d   :  { %v98_v37 = vmul.f32 %v1363_v30, %v97_v35  ;;  %v104_v38 = vmul.f32 %v1365_v36, %v92_v31  ;;  %vm110_vm5 = vweird.f32 %v1365_v36 }
 0x10e   :  { %vm111_vm7 = vmor %vm109_vm6, %vm110_vm5 }
 0x10f   :  { %v102_v40 = vsel %vm101_vm4, %v1363_v30, %v98_v37  ;;  %v105_v41 = vmul.f32 %v1365_v36, %v104_v38 }
 0x110   :  { %v113_v42 = vmul.f32 %v102_v40, %v79_v13 }
 0x111   :  { %v106_v44 = vmul.f32 0.5, %v105_v41 }
 0x112   :  { %v118_v45 = vmul.f32 %v1342_v39, %v113_v42 }
 0x113   :  { %v107_v46 = vsub.f32 1.5, %v106_v44 }
 0x114   :  { %v123_v47 = vadd.f32 %v1343_v43, %v118_v45 }
 0x115   :  { %v108_v48 = vmul.f32 %v1365_v36, %v107_v46 }
 0x116   :  { %1231 = vmatmul.msk.f32.vlgmr.msra.gmra.mxu0 %vm63_vm0, %v123_v47 }
 0x117   :  { %v112_v49 = vsel %vm111_vm7, %v1365_v36, %v108_v48 }
 0x118   :  { %v114_v50 = vmul.f32 %v112_v49, %v80_v18  ;;  %v262_v49 = vld [vmem:[%s1972_s6 + $0x8] sm:$0xff] }
 0x11a   :  { %v119_v51 = vmul.f32 %v1342_v39, %v114_v50 }
 0x11c   :  { %v124_v52 = vadd.f32 %v1343_v43, %v119_v51 }
 0x11e   :  { %1232 = vmatmul.msk.f32.gmra.mxu0 %vm63_vm0, %v124_v52 }
 0x193   :  { %v156_v54 = vpop.f32.mrf.mxu0 }
 0x194   :  { %v157_v55 = vadd.f32 %v1344_v53, %v156_v54 }
 0x196   :  { %267 = vrot.lane.b32.xlu1 %v157_v55, %s1449_s28 }
 0x19b   :  { %v159_v56 = vpop.f32.mrf.mxu0 }
 0x19c   :  { %v160_v57 = vadd.f32 %v1344_v53, %v159_v56 }
 0x19e   :  { %269 = vrot.lane.b32.xlu0 %v160_v57, %s1449_s28  ;;  %166 = vrot.lane.b32.xlu2 %v160_v57, %s1450_s29  ;;  %v1322_v21 = vpack.i.bf16 %v157_v55, %v160_v57 }
 0x1a6   :  { %164 = vrot.lane.b32.xlu2 %v157_v55, %s1450_s29 }
 0x1ae   :  { %263 = vrot.lane.b32.xlu2 %v157_v55, %s1451_s0 }
 0x1b6   :  { %265 = vrot.lane.b32.xlu2 %v160_v57, %s1451_s0 }
 0x1f8   :  { %v167_v58 = vpop.permute.xlu2 %166 }
 0x1f9   :  { %1233 = vmatpush.xpose.msk.msra.mxu1 %vm168_vm8, %v167_v58  ;;  %1311 = vmatpush.xpose.msk.msra.mxu2 %vm168_vm8, %v167_v58 }
 0x200   :  { %v165_v59 = vpop.permute.xlu2 %164 }
 0x201   :  { %1234 = vmatpush.xpose.msk.msra.mxu1 %vm168_vm8, %v165_v59  ;;  %1312 = vmatpush.xpose.msk.msra.mxu2 %vm168_vm8, %v165_v59 }
 0x204   :  { %1235 = vmatmul.msk.f32.vlgmr.msra.gmra.mxu1 %vm168_vm8, %v157_v55  ;;  %1236 = vmatmul.msk.f32.vlgmr.msra.gmra.mxu2 %vm168_vm8, %v160_v57 }
 0x205   :  { %415 = vmatpush.msrb.mxu1 %v262_v49 }
 0x208   :  { %v268_v61 = vpop.permute.xlu1 %267  ;;  %v264_v62 = vpop.permute.xlu2 %263 }
 0x210   :  { %v270_v60 = vpop.permute.xlu0 %269  ;;  %v266_v63 = vpop.permute.xlu2 %265 }
 0x211   :  { %1239 = vmatpush.xpose.msk.msra.mxu3 %vm168_vm8, %v270_v60 }
 0x215   :  { %1240 = vmatpush.xpose.msk.msra.mxu3 %vm168_vm8, %v268_v61  ;;  %v261_v61 = vld [vmem:[%s1972_s6] sm:$0xff] }
 0x216   :  { %416 = vmatpush.msrb.mxu1 %v261_v61 }
 0x218   :  { %1241 = vmatmul.msk.f32.vlgmr.msra.gmra.mxu3 %vm168_vm8, %v264_v62  ;;  %v1246_v62 = vld [vmem:[%s1972_s6 + $0x18] sm:$0xff] }
 0x219   :  { %386 = vmatpush.msrb.mxu0 %v1246_v62 }
 0x220   :  { %1242 = vmatmul.msk.f32.gmra.mxu3 %vm168_vm8, %v266_v63  ;;  %v1245_v63 = vld [vmem:[%s1972_s6 + $0x10] sm:$0xff] }
 0x221   :  { %387 = vmatpush.msrb.mxu0 %v1245_v63 }
 0x281   :  { %v194_v1 = vpop.f32.mrf.mxu1 }
 0x282   :  { %v200_v4 = vmul.f32 0.25, %v194_v1 }
 0x284   :  { %v202_v5 = vadd.f32 %v200_v4, %v1613_v3 }
 0x286   :  { %v204_v6 = vsel %vm168_vm8, %v202_v5, -inf }
 0x287   :  { %v197_v7 = vpop.f32.mrf.mxu2  ;;  %205 = vmax.xlane.f32.xlu2 %v204_v6 }
 0x288   :  { %v201_v9 = vmul.f32 0.25, %v197_v7 }
 0x28a   :  { %v203_v11 = vadd.f32 %v201_v9, %v1620_v8 }
 0x28c   :  { %v207_v12 = vsel %vm168_vm8, %v203_v11, -inf }
 0x28d   :  { %208 = vmax.xlane.f32.xlu0 %v207_v12  ;;  %v1345_v12 = vld [vmem:[%s1973_s7] ss:$0 sm:$0xff] }
 0x29b   :  { %v296_v13 = vpop.f32.mrf.mxu3 }
 0x29c   :  { %v302_v14 = vmul.f32 0.25, %v296_v13 }
 0x29e   :  { %v304_v15 = vadd.f32 %v302_v14, %v1613_v3 }
 0x2a0   :  { %v306_v16 = vsel %vm168_vm8, %v304_v15, -inf }
 0x2a1   :  { %307 = vmax.xlane.f32.xlu1 %v306_v16 }
 0x2a3   :  { %v299_v17 = vpop.f32.mrf.mxu3 }
 0x2a4   :  { %v303_v18 = vmul.f32 0.25, %v299_v17 }
 0x2a6   :  { %v305_v19 = vadd.f32 %v303_v18, %v1620_v8 }
 0x2a8   :  { %v309_v20 = vsel %vm168_vm8, %v305_v19, -inf }
 0x2a9   :  { %310 = vmax.xlane.f32.xlu2 %v309_v20 }
 0x2c1   :  { %1323 = vrot.lane.b32.xlu2 %v1322_v21, %s1452_s21 }
 0x2fa   :  { %v206_v22 = vpop.xlane.xlu2 %205 }
 0x2fb   :  { %v210_v23 = vsub.f32 %v202_v5, %v206_v22 }
 0x2fd   :  { %v212_v24 = vmul.f32 1.442695, %v210_v23 }
 0x2ff   :  { %1366 = vpow2.f32 %v212_v24 }
 0x300   :  { %v209_v25 = vpop.xlane.xlu0 %208 }
 0x301   :  { %v211_v26 = vsub.f32 %v203_v11, %v209_v25 }
 0x303   :  { %v214_v27 = vmul.f32 1.442695, %v211_v26 }
 0x305   :  { %v1367_v28 = vpop.eup %1366  ;;  %1368 = vpow2.f32 %v214_v27 }
 0x306   :  { %v216_v29 = vsel %vm168_vm8, %v1367_v28, 0.0 }
 0x307   :  { %217 = vadd.xlane.f32.xlu0 %v216_v29 }
 0x30b   :  { %v1369_v30 = vpop.eup %1368 }
 0x30c   :  { %v219_v31 = vsel %vm168_vm8, %v1369_v30, 0.0 }
 0x30d   :  { %220 = vadd.xlane.f32.xlu1 %v219_v31  ;;  %v490_v31 = vld [vmem:[%s1976_s10 + $0x10] sm:$0xff] }
 0x314   :  { %v308_v32 = vpop.xlane.xlu1 %307 }
 0x315   :  { %v312_v33 = vsub.f32 %v304_v15, %v308_v32  ;;  %v489_v32 = vld [vmem:[%s1976_s10 + $0x8] sm:$0xff] }
 0x317   :  { %v314_v34 = vmul.f32 1.442695, %v312_v33  ;;  %v488_v33 = vld [vmem:[%s1976_s10] sm:$0xff] }
 0x319   :  { %1370 = vpow2.f32 %v314_v34 }
 0x31c   :  { %v311_v35 = vpop.xlane.xlu2 %310 }
 0x31d   :  { %v313_v36 = vsub.f32 %v305_v19, %v311_v35 }
 0x31f   :  { %v1371_v37 = vpop.eup %1370  ;;  %v316_v38 = vmul.f32 1.442695, %v313_v36 }
 0x320   :  { %v318_v39 = vsel %vm168_vm8, %v1371_v37, 0.0 }
 0x321   :  { %1372 = vpow2.f32 %v316_v38  ;;  %319 = vadd.xlane.f32.xlu0 %v318_v39  ;;  %v557_v38 = vld [vmem:[%s1978_s12 + $0x70] sm:$0xff]  ;;  %v556_v39 = vld [vmem:[%s1978_s12 + $0x68] sm:$0xff] }
 0x324   :  { %v1324_v40 = vpop.permute.xlu2 %1323 }
 0x325   :  { %v1325_v41 = vunpack.i.l.bf16 %v1324_v40  ;;  %v1326_v43 = vunpack.i.h.bf16 %v1324_v40 }
 0x326   :  { %1328 = vrot.lane.b32.xlu1 %v1322_v21, %s1453_s22 }
 0x327   :  { %v1373_v42 = vpop.eup %1372  ;;  %252 = vmatpush.msrb.mxu2 %v1325_v41 }
 0x328   :  { %v321_v44 = vsel %vm168_vm8, %v1373_v42, 0.0 }
 0x329   :  { %322 = vadd.xlane.f32.xlu0 %v321_v44  ;;  %253 = vmatpush.msrb.mxu2 %v1326_v43 }
 0x37a   :  { %v218_v45 = vpop.xlane.xlu0 %217 }
 0x37b   :  { %1374 = vrcp.f32 %v218_v45 }
 0x380   :  { %v221_v46 = vpop.xlane.xlu1 %220 }
 0x381   :  { %v1375_v47 = vpop.eup %1374  ;;  %1376 = vrcp.f32 %v221_v46 }
 0x382   :  { %v224_v48 = vmul.f32 %v1375_v47, %v1367_v28 }
 0x384   :  { %1237 = vmatmul.msk.f32.vlgmr.msrb.gmra.mxu2 %vm168_vm8, %v224_v48 }
 0x387   :  { %v1377_v50 = vpop.eup %1376 }
 0x388   :  { %v225_v51 = vmul.f32 %v1377_v50, %v1369_v30  ;;  %v491_v30 = vld [vmem:[%s1976_s10 + $0x18] sm:$0xff] }
 0x389   :  { %514 = vmatpush.msrb.mxu3 %v491_v30 }
 0x38b   :  { %515 = vmatpush.msrb.mxu3 %v490_v31 }
 0x38c   :  { %1238 = vmatmul.msk.f32.gmra.mxu2 %vm168_vm8, %v225_v51 }
 0x38d   :  { %516 = vmatpush.msrb.mxu3 %v489_v32 }
 0x38f   :  { %517 = vmatpush.msrb.mxu3 %v488_v33 }
 0x394   :  { %v320_v52 = vpop.xlane.xlu0 %319 }
 0x395   :  { %1378 = vrcp.f32 %v320_v52  ;;  %v1346_v52 = vld [vmem:[%s1974_s8] ss:$0 sm:$0xff] }
 0x398   :  { %v1329_v53 = vpop.permute.xlu1 %1328 }
 0x399   :  { %v1330_v54 = vunpack.i.l.bf16 %v1329_v53  ;;  %v1331_v56 = vunpack.i.h.bf16 %v1329_v53 }
 0x39b   :  { %v1379_v55 = vpop.eup %1378  ;;  %354 = vmatpush.msra.mxu2 %v1330_v54 }
 0x39c   :  { %v326_v57 = vmul.f32 %v1379_v55, %v1371_v37  ;;  %v323_v58 = vpop.xlane.xlu0 %322  ;;  %v558_v37 = vld [vmem:[%s1978_s12 + $0x78] sm:$0xff] }
 0x39d   :  { %1380 = vrcp.f32 %v323_v58  ;;  %355 = vmatpush.msra.mxu2 %v1331_v56  ;;  %v1347_v56 = vld [vmem:[%s1975_s9] ss:$0 sm:$0xff] }
 0x39e   :  { %1243 = vmatmul.msk.f32.vlgmr.msra.gmra.mxu2 %vm168_vm8, %v326_v57 }
 0x39f   :  { %559 = vmatpush.msrb.mxu2 %v558_v37 }
 0x3a1   :  { %560 = vmatpush.msrb.mxu2 %v557_v38 }
 0x3a3   :  { %v1381_v59 = vpop.eup %1380  ;;  %561 = vmatpush.msrb.mxu2 %v556_v39 }
 0x3a4   :  { %v327_v60 = vmul.f32 %v1381_v59, %v1373_v42  ;;  %v555_v42 = vld [vmem:[%s1978_s12 + $0x60] sm:$0xff] }
 0x3a5   :  { %562 = vmatpush.msrb.mxu2 %v555_v42  ;;  %v1349_v42 = vld [vmem:[%s1979_s13] ss:$0 sm:$0xff] }
 0x3a6   :  { %1244 = vmatmul.msk.f32.gmra.mxu2 %vm168_vm8, %v327_v60 }
 0x407   :  { %v255_v1 = vpop.f32.mrf.mxu2 }
 0x408   :  { %1249 = vmatmul.msk.f32.vlgmr.msrb.gmra.mxu1 %vm168_vm8, %v255_v1 }
 0x40f   :  { %v258_v4 = vpop.f32.mrf.mxu2 }
 0x410   :  { %1250 = vmatmul.msk.f32.gmra.mxu1 %vm168_vm8, %v258_v4 }
 0x421   :  { %v357_v5 = vpop.f32.mrf.mxu2 }
 0x422   :  { %1247 = vmatmul.msk.f32.vlgmr.msrb.gmra.mxu0 %vm168_vm8, %v357_v5  ;;  %v554_v5 = vld [vmem:[%s1978_s12 + $0x58] sm:$0xff] }
 0x423   :  { %563 = vmatpush.msrb.mxu2 %v554_v5 }
 0x429   :  { %v360_v6 = vpop.f32.mrf.mxu2 }
 0x42a   :  { %1248 = vmatmul.msk.f32.gmra.mxu0 %vm168_vm8, %v360_v6  ;;  %v553_v6 = vld [vmem:[%s1978_s12 + $0x50] sm:$0xff] }
 0x42b   :  { %564 = vmatpush.msrb.mxu2 %v553_v6 }
 0x485   :  { %v418_v7 = vpop.f32.mrf.mxu1 }
 0x48d   :  { %v421_v16 = vpop.f32.mrf.mxu1 }
 0x49f   :  { %v389_v9 = vpop.f32.mrf.mxu0 }
 0x4a0   :  { %v419_v11 = vadd.f32 %v418_v7, %v389_v9  ;;  %v552_v7 = vld [vmem:[%s1978_s12 + $0x48] sm:$0xff]  ;;  %v551_v9 = vld [vmem:[%s1978_s12 + $0x40] sm:$0xff] }
 0x4a1   :  { %565 = vmatpush.msrb.mxu2 %v552_v7 }
 0x4a2   :  { %v424_v13 = vadd.f32 %v419_v11, %v1550_v0  ;;  %v550_v11 = vld [vmem:[%s1978_s12 + $0x38] sm:$0xff] }
 0x4a3   :  { %566 = vmatpush.msrb.mxu2 %v551_v9 }
 0x4a4   :  { %v1658_v14 = vadd.f32 %v1345_v12, %v424_v13  ;;  %v548_v13 = vld [vmem:[%s1978_s12 + $0x28] sm:$0xff] }
 0x4a5   :  { %567 = vmatpush.msrb.mxu2 %v550_v11 }
 0x4a6   :  { %v434_v15 = vsel %vm63_vm0, %v1658_v14, 0.0 }
 0x4a7   :  { %435 = vadd.xlane.f32.xlu0 %v434_v15  ;;  %v392_v17 = vpop.f32.mrf.mxu0  ;;  %v547_v15 = vld [vmem:[%s1978_s12 + $0x20] sm:$0xff] }
 0x4a8   :  { %v422_v18 = vadd.f32 %v421_v16, %v392_v17  ;;  %v546_v16 = vld [vmem:[%s1978_s12 + $0x18] sm:$0xff]  ;;  %v545_v17 = vld [vmem:[%s1978_s12 + $0x10] sm:$0xff] }
 0x4aa   :  { %v425_v19 = vadd.f32 %v422_v18, %v1557_v2  ;;  %v544_v18 = vld [vmem:[%s1978_s12 + $0x8] sm:$0xff] }
 0x4ac   :  { %v1663_v20 = vadd.f32 %v1345_v12, %v425_v19  ;;  %v549_v12 = vld [vmem:[%s1978_s12 + $0x30] sm:$0xff]  ;;  %v543_v19 = vld [vmem:[%s1978_s12] sm:$0xff] }
 0x4ad   :  { %568 = vmatpush.msrb.mxu2 %v549_v12 }
 0x4ae   :  { %v437_v21 = vsel %vm63_vm0, %v1663_v20, 0.0 }
 0x4af   :  { %438 = vadd.xlane.f32.xlu2 %v437_v21  ;;  %569 = vmatpush.msrb.mxu2 %v548_v13  ;;  %v1348_v21 = vld [vmem:[%s1977_s11] ss:$0 sm:$0xff] }
 0x4b1   :  { %570 = vmatpush.msrb.mxu2 %v547_v15 }
 0x4b3   :  { %571 = vmatpush.msrb.mxu2 %v546_v16 }
 0x4b5   :  { %572 = vmatpush.msrb.mxu2 %v545_v17 }
 0x4b7   :  { %573 = vmatpush.msrb.mxu2 %v544_v18 }
 0x4b9   :  { %574 = vmatpush.msrb.mxu2 %v543_v19  ;;  %v1350_v19 = vld [vmem:[%s1968_s2 + $0x1] ss:$0 sm:$0xff] }
 0x51a   :  { %v436_v22 = vpop.xlane.xlu0 %435 }
 0x51b   :  { %v440_v0 = vmul.f32 %v436_v22, %v1561_v10 }
 0x51d   :  { %v442_v23 = vsub.f32 %v1658_v14, %v440_v0 }
 0x51f   :  { %v444_v24 = vmul.f32 %v442_v23, %v442_v23 }
 0x521   :  { %v446_v25 = vsel %vm63_vm0, %v444_v24, 0.0 }
 0x522   :  { %447 = vadd.xlane.f32.xlu0 %v446_v25  ;;  %v439_v26 = vpop.xlane.xlu2 %438 }
 0x523   :  { %v441_v27 = vmul.f32 %v439_v26, %v1561_v10 }
 0x525   :  { %v443_v2 = vsub.f32 %v1663_v20, %v441_v27 }
 0x527   :  { %v445_v28 = vmul.f32 %v443_v2, %v443_v2 }
 0x529   :  { %v449_v29 = vsel %vm63_vm0, %v445_v28, 0.0 }
 0x52a   :  { %450 = vadd.xlane.f32.xlu1 %v449_v29 }
 0x595   :  { %v448_v34 = vpop.xlane.xlu0 %447 }
 0x596   :  { %v452_v35 = vmul.f32 %v448_v34, %v1561_v10 }
 0x598   :  { %v454_v36 = vadd.f32 1e-05, %v452_v35 }
 0x59a   :  { %1382 = vrsqrt.f32 %v454_v36  ;;  %vm462_vm10 = vweird.f32 %v454_v36 }
 0x59d   :  { %v451_v40 = vpop.xlane.xlu1 %450 }
 0x59e   :  { %v453_v41 = vmul.f32 %v451_v40, %v1561_v10 }
 0x5a0   :  { %v1383_v43 = vpop.eup %1382  ;;  %v455_v44 = vadd.f32 1e-05, %v453_v41 }
 0x5a1   :  { %v457_v45 = vmul.f32 %v1383_v43, %v454_v36  ;;  %vm463_vm9 = vweird.f32 %v1383_v43 }
 0x5a2   :  { %1384 = vrsqrt.f32 %v455_v44  ;;  %vm464_vm11 = vmor %vm462_vm10, %vm463_vm9  ;;  %vm472_vm13 = vweird.f32 %v455_v44 }
 0x5a3   :  { %v458_v46 = vmul.f32 %v1383_v43, %v457_v45 }
 0x5a5   :  { %v459_v47 = vmul.f32 0.5, %v458_v46 }
 0x5a7   :  { %v460_v48 = vsub.f32 1.5, %v459_v47 }
 0x5a8   :  { %v1385_v49 = vpop.eup %1384 }
 0x5a9   :  { %v461_v50 = vmul.f32 %v1383_v43, %v460_v48  ;;  %v467_v51 = vmul.f32 %v1385_v49, %v455_v44  ;;  %vm473_vm12 = vweird.f32 %v1385_v49 }
 0x5aa   :  { %vm474_vm14 = vmor %vm472_vm13, %vm473_vm12 }
 0x5ab   :  { %v465_v53 = vsel %vm464_vm11, %v1383_v43, %v461_v50  ;;  %v468_v54 = vmul.f32 %v1385_v49, %v467_v51 }
 0x5ac   :  { %v476_v55 = vmul.f32 %v465_v53, %v442_v23 }
 0x5ad   :  { %v469_v57 = vmul.f32 0.5, %v468_v54 }
 0x5ae   :  { %v481_v58 = vmul.f32 %v1346_v52, %v476_v55 }
 0x5af   :  { %v470_v59 = vsub.f32 1.5, %v469_v57 }
 0x5b0   :  { %v486_v60 = vadd.f32 %v1347_v56, %v481_v58 }
 0x5b1   :  { %v471_v61 = vmul.f32 %v1385_v49, %v470_v59  ;;  %v1258_v59 = vld [vmem:[%s1970_s4 + $0x38] sm:$0xff] }
 0x5b2   :  { %1251 = vmatmul.msk.f32.vlgmr.msrb.gmra.mxu3 %vm63_vm0, %v486_v60  ;;  %676 = vmatpush.msra.mxu0 %v1258_v59  ;;  %v1257_v60 = vld [vmem:[%s1970_s4 + $0x30] sm:$0xff] }
 0x5b3   :  { %v475_v62 = vsel %vm474_vm14, %v1385_v49, %v471_v61  ;;  %v1256_v61 = vld [vmem:[%s1970_s4 + $0x28] sm:$0xff] }
 0x5b4   :  { %v477_v63 = vmul.f32 %v475_v62, %v443_v2  ;;  %677 = vmatpush.msra.mxu0 %v1257_v60  ;;  %v1255_v62 = vld [vmem:[%s1970_s4 + $0x20] sm:$0xff] }
 0x5b6   :  { %v482_v1 = vmul.f32 %v1346_v52, %v477_v63  ;;  %678 = vmatpush.msra.mxu0 %v1256_v61 }
 0x5b8   :  { %v487_v4 = vadd.f32 %v1347_v56, %v482_v1  ;;  %679 = vmatpush.msra.mxu0 %v1255_v62 }
 0x5ba   :  { %1252 = vmatmul.msk.f32.gmra.mxu3 %vm63_vm0, %v487_v4 }
 0x635   :  { %v519_v22 = vpop.f32.mrf.mxu3 }
 0x636   :  { %v520_v0 = vadd.f32 %v1348_v21, %v519_v22 }
 0x638   :  { %v527_v23 = vmul.f32 0.044715, %v520_v0  ;;  %v525_v35 = vmul.f32 0.5, %v520_v0 }
 0x63a   :  { %v529_v24 = vmul.f32 %v527_v23, %v520_v0  ;;  %v1351_v23 = vld [vmem:[%s1969_s3 + $0x1] ss:$0 sm:$0xff]  ;;  %s1455_s3 = smov 128  }
 0x63c   :  { %v531_v25 = vmul.f32 %v529_v24, %v520_v0 }
 0x63d   :  { %v522_v26 = vpop.f32.mrf.mxu3 }
 0x63e   :  { %v523_v27 = vadd.f32 %v1348_v21, %v522_v26  ;;  %v533_v2 = vadd.f32 %v531_v25, %v520_v0 }
 0x640   :  { %v535_v28 = vmul.f32 0.7978846, %v533_v2  ;;  %v528_v29 = vmul.f32 0.044715, %v523_v27  ;;  %v526_v39 = vmul.f32 0.5, %v523_v27 }
 0x642   :  { %1386 = vtanh.f32 %v535_v28  ;;  %v530_v30 = vmul.f32 %v528_v29, %v523_v27 }
 0x644   :  { %v532_v31 = vmul.f32 %v530_v30, %v523_v27 }
 0x646   :  { %v534_v32 = vadd.f32 %v532_v31, %v523_v27 }
 0x648   :  { %v1387_v33 = vpop.eup %1386  ;;  %v536_v34 = vmul.f32 0.7978846, %v534_v32  ;;  %v1352_v32 = vld [vmem:[%s1971_s5 + $0x1] ss:$0 sm:$0xff]  ;;  %s1456_s5 = smov 8  }
 0x649   :  { %v539_v36 = vadd.f32 1.0, %v1387_v33 }
 0x64a   :  { %1388 = vtanh.f32 %v536_v34 }
 0x64b   :  { %v541_v37 = vmul.f32 %v539_v36, %v525_v35 }
 0x64d   :  { %575 = vmatmul.f32.vlgmr.msrb.gmra.mxu2 %v541_v37 }
 0x650   :  { %v1389_v38 = vpop.eup %1388 }
 0x651   :  { %v540_v40 = vadd.f32 1.0, %v1389_v38 }
 0x653   :  { %v542_v41 = vmul.f32 %v540_v40, %v526_v39 }
 0x655   :  { %578 = vmatmul.f32.gmra.mxu2 %v542_v41 }
 0x6d0   :  { %v576_v43 = vpop.f32.mrf.mxu2 }
 0x6d1   :  { %v582_v44 = vadd.f32 %v576_v43, %v1658_v14 }
 0x6d3   :  { %v1750_v45 = vadd.f32 %v1349_v42, %v582_v44 }
 0x6d5   :  { %v594_v46 = vsel %vm63_vm0, %v1750_v45, 0.0 }
 0x6d6   :  { %595 = vadd.xlane.f32.xlu0 %v594_v46 }
 0x6d8   :  { %v579_v47 = vpop.f32.mrf.mxu2 }
 0x6d9   :  { %v583_v48 = vadd.f32 %v579_v47, %v1663_v20 }
 0x6db   :  { %v1755_v49 = vadd.f32 %v1349_v42, %v583_v48 }
 0x6dd   :  { %v597_v50 = vsel %vm63_vm0, %v1755_v49, 0.0 }
 0x6de   :  { %598 = vadd.xlane.f32.xlu0 %v597_v50 }
 0x749   :  { %v596_v51 = vpop.xlane.xlu0 %595 }
 0x74a   :  { %v600_v52 = vmul.f32 %v596_v51, %v1561_v10 }
 0x74c   :  { %v602_v14 = vsub.f32 %v1750_v45, %v600_v52 }
 0x74e   :  { %v604_v53 = vmul.f32 %v602_v14, %v602_v14 }
 0x750   :  { %v606_v54 = vsel %vm63_vm0, %v604_v53, 0.0 }
 0x751   :  { %607 = vadd.xlane.f32.xlu0 %v606_v54  ;;  %v599_v55 = vpop.xlane.xlu0 %598 }
 0x752   :  { %v601_v56 = vmul.f32 %v599_v55, %v1561_v10 }
 0x754   :  { %v603_v20 = vsub.f32 %v1755_v49, %v601_v56 }
 0x756   :  { %v605_v57 = vmul.f32 %v603_v20, %v603_v20 }
 0x758   :  { %v609_v58 = vsel %vm63_vm0, %v605_v57, 0.0 }
 0x759   :  { %610 = vadd.xlane.f32.xlu0 %v609_v58 }
 0x7c4   :  { %v608_v63 = vpop.xlane.xlu0 %607 }
 0x7c5   :  { %v612_v1 = vmul.f32 %v608_v63, %v1561_v10 }
 0x7c7   :  { %v614_v4 = vadd.f32 1e-05, %v612_v1 }
 0x7c9   :  { %1390 = vrsqrt.f32 %v614_v4  ;;  %vm622_vm1 = vweird.f32 %v614_v4 }
 0x7cc   :  { %v611_v5 = vpop.xlane.xlu0 %610 }
 0x7cd   :  { %v613_v6 = vmul.f32 %v611_v5, %v1561_v10 }
 0x7cf   :  { %v1391_v7 = vpop.eup %1390  ;;  %v615_v9 = vadd.f32 1e-05, %v613_v6 }
 0x7d0   :  { %v617_v11 = vmul.f32 %v1391_v7, %v614_v4  ;;  %vm623_vm15 = vweird.f32 %v1391_v7 }
 0x7d1   :  { %1392 = vrsqrt.f32 %v615_v9  ;;  %vm624_vm2 = vmor %vm622_vm1, %vm623_vm15  ;;  %vm632_vm4 = vweird.f32 %v615_v9 }
 0x7d2   :  { %v618_v12 = vmul.f32 %v1391_v7, %v617_v11 }
 0x7d4   :  { %v619_v13 = vmul.f32 0.5, %v618_v12 }
 0x7d6   :  { %v620_v15 = vsub.f32 1.5, %v619_v13 }
 0x7d7   :  { %v1393_v16 = vpop.eup %1392 }
 0x7d8   :  { %v621_v17 = vmul.f32 %v1391_v7, %v620_v15  ;;  %v627_v18 = vmul.f32 %v1393_v16, %v615_v9  ;;  %vm633_vm3 = vweird.f32 %v1393_v16 }
 0x7d9   :  { %vm634_vm5 = vmor %vm632_vm4, %vm633_vm3 }
 0x7da   :  { %v625_v21 = vsel %vm624_vm2, %v1391_v7, %v621_v17  ;;  %v628_v22 = vmul.f32 %v1393_v16, %v627_v18 }
 0x7db   :  { %v636_v0 = vmul.f32 %v625_v21, %v602_v14 }
 0x7dc   :  { %v629_v24 = vmul.f32 0.5, %v628_v22 }
 0x7dd   :  { %v641_v25 = vmul.f32 %v1350_v19, %v636_v0 }
 0x7de   :  { %v630_v26 = vsub.f32 1.5, %v629_v24  ;;  %v1269_v24 = vld [vmem:[%s1972_s6 + $0x28] sm:$0xff] }
 0x7df   :  { %v646_v27 = vadd.f32 %v1351_v23, %v641_v25  ;;  %940 = vmatpush.msra.mxu2 %v1269_v24 }
 0x7e0   :  { %v631_v2 = vmul.f32 %v1393_v16, %v630_v26 }
 0x7e1   :  { %1260 = vmatmul.msk.f32.vlgmr.msra.gmra.mxu0 %vm63_vm0, %v646_v27 }
 0x7e2   :  { %v635_v28 = vsel %vm634_vm5, %v1393_v16, %v631_v2 }
 0x7e3   :  { %v637_v29 = vmul.f32 %v635_v28, %v603_v20 }
 0x7e5   :  { %v642_v30 = vmul.f32 %v1350_v19, %v637_v29 }
 0x7e7   :  { %v647_v31 = vadd.f32 %v1351_v23, %v642_v30 }
 0x7e9   :  { %1261 = vmatmul.msk.f32.gmra.mxu0 %vm63_vm0, %v647_v31 }
 0x85e   :  { %v681_v33 = vpop.f32.mrf.mxu0 }
 0x85f   :  { %v682_v34 = vadd.f32 %v1352_v32, %v681_v33 }
 0x861   :  { %689 = vrot.lane.b32.xlu0 %v682_v34, %s1450_s29 }
 0x866   :  { %v684_v35 = vpop.f32.mrf.mxu0 }
 0x867   :  { %v685_v36 = vadd.f32 %v1352_v32, %v684_v35 }
 0x869   :  { %792 = vrot.lane.b32.xlu0 %v682_v34, %s1449_s28  ;;  %794 = vrot.lane.b32.xlu1 %v685_v36, %s1449_s28  ;;  %v1332_v59 = vpack.i.bf16 %v682_v34, %v685_v36 }
 0x86a   :  { %691 = vrot.lane.b32.xlu2 %v685_v36, %s1450_s29 }
 0x871   :  { %790 = vrot.lane.b32.xlu0 %v685_v36, %s1451_s0 }
 0x872   :  { %788 = vrot.lane.b32.xlu2 %v682_v34, %s1451_s0 }
 0x8c4   :  { %v692_v37 = vpop.permute.xlu2 %691 }
 0x8c5   :  { %1262 = vmatpush.xpose.msk.msra.mxu1 %vm168_vm8, %v692_v37 }
 0x8cc   :  { %v789_v41 = vpop.permute.xlu2 %788 }
 0x8d3   :  { %v690_v38 = vpop.permute.xlu0 %689 }
 0x8d4   :  { %1263 = vmatpush.xpose.msk.msra.mxu1 %vm168_vm8, %v690_v38  ;;  %v1268_v38 = vld [vmem:[%s1972_s6 + $0x20] sm:$0xff] }
 0x8d5   :  { %941 = vmatpush.msra.mxu2 %v1268_v38 }
 0x8d7   :  { %1264 = vmatmul.msk.f32.vlgmr.msra.gmra.mxu1 %vm168_vm8, %v682_v34 }
 0x8db   :  { %v795_v39 = vpop.permute.xlu1 %794  ;;  %v793_v40 = vpop.permute.xlu0 %792 }
 0x8dc   :  { %1270 = vmatpush.xpose.msk.msrb.mxu0 %vm168_vm8, %v795_v39  ;;  %v1277_v39 = vld [vmem:[%s1972_s6 + $0x38] sm:$0xff] }
 0x8df   :  { %1265 = vmatmul.msk.f32.gmra.mxu1 %vm168_vm8, %v685_v36 }
 0x8e0   :  { %1271 = vmatpush.xpose.msk.msrb.mxu0 %vm168_vm8, %v793_v40  ;;  %v1276_v40 = vld [vmem:[%s1972_s6 + $0x30] sm:$0xff] }
 0x8e3   :  { %1272 = vmatmul.msk.f32.vlgmr.msrb.gmra.mxu0 %vm168_vm8, %v789_v41  ;;  %v791_v42 = vpop.permute.xlu0 %790 }
 0x8eb   :  { %1273 = vmatmul.msk.f32.gmra.mxu0 %vm168_vm8, %v791_v42 }
 0x954   :  { %v718_v43 = vpop.f32.mrf.mxu1 }
 0x955   :  { %v724_v44 = vmul.f32 0.25, %v718_v43 }
 0x957   :  { %v726_v46 = vadd.f32 %v724_v44, %v1613_v3 }
 0x959   :  { %v728_v47 = vsel %vm168_vm8, %v726_v46, -inf }
 0x95a   :  { %729 = vmax.xlane.f32.xlu2 %v728_v47 }
 0x95c   :  { %v721_v48 = vpop.f32.mrf.mxu1 }
 0x95d   :  { %v725_v50 = vmul.f32 0.25, %v721_v48 }
 0x95f   :  { %v727_v51 = vadd.f32 %v725_v50, %v1620_v8  ;;  %v1353_v50 = vld [vmem:[%s1973_s7 + $0x1] ss:$0 sm:$0xff] }
 0x960   :  { %v821_v52 = vpop.f32.mrf.mxu0 }
 0x961   :  { %v827_v14 = vmul.f32 0.25, %v821_v52  ;;  %v731_v53 = vsel %vm168_vm8, %v727_v51, -inf }
 0x962   :  { %732 = vmax.xlane.f32.xlu0 %v731_v53 }
 0x963   :  { %v829_v54 = vadd.f32 %v827_v14, %v1613_v3 }
 0x965   :  { %v831_v55 = vsel %vm168_vm8, %v829_v54, -inf }
 0x966   :  { %832 = vmax.xlane.f32.xlu1 %v831_v55 }
 0x968   :  { %v824_v56 = vpop.f32.mrf.mxu0 }
 0x969   :  { %v828_v20 = vmul.f32 0.25, %v824_v56 }
 0x96b   :  { %v830_v57 = vadd.f32 %v828_v20, %v1620_v8 }
 0x96d   :  { %v834_v58 = vsel %vm168_vm8, %v830_v57, -inf }
 0x96e   :  { %835 = vmax.xlane.f32.xlu2 %v834_v58 }
 0x976   :  { %1333 = vrot.lane.b32.xlu0 %v1332_v59, %s1452_s21 }
 0x9cd   :  { %v730_v60 = vpop.xlane.xlu2 %729 }
 0x9ce   :  { %v734_v61 = vsub.f32 %v726_v46, %v730_v60 }
 0x9d0   :  { %v736_v62 = vmul.f32 1.442695, %v734_v61 }
 0x9d2   :  { %1394 = vpow2.f32 %v736_v62 }
 0x9d5   :  { %v733_v63 = vpop.xlane.xlu0 %732 }
 0x9d6   :  { %v735_v1 = vsub.f32 %v727_v51, %v733_v63 }
 0x9d8   :  { %v1395_v3 = vpop.eup %1394  ;;  %v738_v4 = vmul.f32 1.442695, %v735_v1 }
 0x9d9   :  { %v833_v5 = vpop.xlane.xlu1 %832  ;;  %v740_v6 = vsel %vm168_vm8, %v1395_v3, 0.0 }
 0x9da   :  { %1396 = vpow2.f32 %v738_v4  ;;  %v837_v7 = vsub.f32 %v829_v54, %v833_v5  ;;  %741 = vadd.xlane.f32.xlu1 %v740_v6  ;;  %v1288_v4 = vld [vmem:[%s1976_s10 + $0x38] sm:$0xff]  ;;  %v1287_v5 = vld [vmem:[%s1976_s10 + $0x30] sm:$0xff]  ;;  %v1286_v6 = vld [vmem:[%s1976_s10 + $0x28] sm:$0xff] }
 0x9db   :  { %1044 = vmatpush.msra.mxu0 %v1288_v4 }
 0x9dc   :  { %v839_v8 = vmul.f32 1.442695, %v837_v7  ;;  %v1285_v7 = vld [vmem:[%s1976_s10 + $0x20] sm:$0xff] }
 0x9dd   :  { %1045 = vmatpush.msra.mxu0 %v1287_v5 }
 0x9de   :  { %1398 = vpow2.f32 %v839_v8 }
 0x9df   :  { %1046 = vmatpush.msra.mxu0 %v1286_v6 }
 0x9e0   :  { %v1397_v9 = vpop.eup %1396 }
 0x9e1   :  { %v836_v11 = vpop.xlane.xlu2 %835  ;;  %v743_v12 = vsel %vm168_vm8, %v1397_v9, 0.0  ;;  %1047 = vmatpush.msra.mxu0 %v1285_v7 }
 0x9e2   :  { %v838_v13 = vsub.f32 %v830_v57, %v836_v11  ;;  %744 = vadd.xlane.f32.xlu1 %v743_v12  ;;  %v1307_v12 = vld [vmem:[%s1978_s12 + $0xf8] sm:$0xff] }
 0x9e4   :  { %v1399_v15 = vpop.eup %1398  ;;  %v841_v16 = vmul.f32 1.442695, %v838_v13  ;;  %v1306_v13 = vld [vmem:[%s1978_s12 + $0xf0] sm:$0xff] }
 0x9e5   :  { %v843_v17 = vsel %vm168_vm8, %v1399_v15, 0.0 }
 0x9e6   :  { %1400 = vpow2.f32 %v841_v16  ;;  %844 = vadd.xlane.f32.xlu2 %v843_v17 }
 0x9e8   :  { %v1334_v18 = vpop.permute.xlu0 %1333 }
 0x9e9   :  { %v1335_v19 = vunpack.i.l.bf16 %v1334_v18  ;;  %v1336_v21 = vunpack.i.h.bf16 %v1334_v18  ;;  %v1304_v18 = vld [vmem:[%s1978_s12 + $0xe0] sm:$0xff] }
 0x9eb   :  { %776 = vmatpush.msra.mxu3 %v1335_v19 }
 0x9ec   :  { %v1401_v22 = vpop.eup %1400 }
 0x9ed   :  { %777 = vmatpush.msra.mxu3 %v1336_v21  ;;  %v846_v0 = vsel %vm168_vm8, %v1401_v22, 0.0 }
 0x9ee   :  { %847 = vadd.xlane.f32.xlu1 %v846_v0 }
 0x9ef   :  { %911 = vmatpush.msrb.mxu3 %v1277_v39 }
 0x9f1   :  { %912 = vmatpush.msrb.mxu3 %v1276_v40 }
 0x9fe   :  { %1338 = vrot.lane.b32.xlu2 %v1332_v59, %s1453_s22 }
 0xa4d   :  { %v742_v23 = vpop.xlane.xlu1 %741 }
 0xa4e   :  { %1402 = vrcp.f32 %v742_v23 }
 0xa54   :  { %v1403_v25 = vpop.eup %1402 }
 0xa55   :  { %v748_v26 = vmul.f32 %v1403_v25, %v1395_v3  ;;  %v745_v27 = vpop.xlane.xlu1 %744 }
 0xa56   :  { %1404 = vrcp.f32 %v745_v27 }
 0xa57   :  { %1266 = vmatmul.msk.f32.vlgmr.msra.gmra.mxu3 %vm168_vm8, %v748_v26 }
 0xa59   :  { %v845_v2 = vpop.xlane.xlu2 %844 }
 0xa5a   :  { %1406 = vrcp.f32 %v845_v2  ;;  %v1354_v2 = vld [vmem:[%s1974_s8 + $0x1] ss:$0 sm:$0xff] }
 0xa5c   :  { %v1405_v28 = vpop.eup %1404 }
 0xa5d   :  { %v749_v29 = vmul.f32 %v1405_v28, %v1397_v9 }
 0xa5f   :  { %1267 = vmatmul.msk.f32.gmra.mxu3 %vm168_vm8, %v749_v29 }
 0xa60   :  { %v1407_v32 = vpop.eup %1406 }
 0xa61   :  { %v1339_v30 = vpop.permute.xlu2 %1338  ;;  %v848_v31 = vpop.xlane.xlu1 %847  ;;  %v851_v35 = vmul.f32 %v1407_v32, %v1399_v15  ;;  %v1305_v15 = vld [vmem:[%s1978_s12 + $0xe8] sm:$0xff] }
 0xa62   :  { %v1340_v33 = vunpack.i.l.bf16 %v1339_v30  ;;  %v1341_v34 = vunpack.i.h.bf16 %v1339_v30  ;;  %1408 = vrcp.f32 %v848_v31  ;;  %v1355_v31 = vld [vmem:[%s1975_s9 + $0x1] ss:$0 sm:$0xff] }
 0xa64   :  { %879 = vmatpush.msrb.mxu1 %v1340_v33 }
 0xa66   :  { %880 = vmatpush.msrb.mxu1 %v1341_v34 }
 0xa67   :  { %1274 = vmatmul.msk.f32.vlgmr.msrb.gmra.mxu1 %vm168_vm8, %v851_v35 }
 0xa68   :  { %v1409_v36 = vpop.eup %1408  ;;  %1090 = vmatpush.msra.mxu1 %v1307_v12 }
 0xa69   :  { %v852_v37 = vmul.f32 %v1409_v36, %v1401_v22 }
 0xa6a   :  { %1091 = vmatpush.msra.mxu1 %v1306_v13 }
 0xa6c   :  { %1092 = vmatpush.msra.mxu1 %v1305_v15 }
 0xa6e   :  { %1093 = vmatpush.msra.mxu1 %v1304_v18 }
 0xa6f   :  { %1275 = vmatmul.msk.f32.gmra.mxu1 %vm168_vm8, %v852_v37 }
 0xada   :  { %v779_v41 = vpop.f32.mrf.mxu3 }
 0xadb   :  { %1280 = vmatmul.msk.f32.vlgmr.msra.gmra.mxu2 %vm168_vm8, %v779_v41  ;;  %v1303_v41 = vld [vmem:[%s1978_s12 + $0xd8] sm:$0xff] }
 0xadc   :  { %1094 = vmatpush.msra.mxu1 %v1303_v41 }
 0xae2   :  { %v782_v42 = vpop.f32.mrf.mxu3 }
 0xae3   :  { %1281 = vmatmul.msk.f32.gmra.mxu2 %vm168_vm8, %v782_v42  ;;  %v1302_v42 = vld [vmem:[%s1978_s12 + $0xd0] sm:$0xff] }
 0xae4   :  { %v882_v43 = vpop.f32.mrf.mxu1  ;;  %1095 = vmatpush.msra.mxu1 %v1302_v42 }
 0xae5   :  { %1278 = vmatmul.msk.f32.vlgmr.msrb.gmra.mxu3 %vm168_vm8, %v882_v43  ;;  %v1301_v43 = vld [vmem:[%s1978_s12 + $0xc8] sm:$0xff] }
 0xae6   :  { %1096 = vmatpush.msra.mxu1 %v1301_v43 }
 0xaec   :  { %v885_v44 = vpop.f32.mrf.mxu1 }
 0xaed   :  { %1279 = vmatmul.msk.f32.gmra.mxu3 %vm168_vm8, %v885_v44  ;;  %v1300_v44 = vld [vmem:[%s1978_s12 + $0xc0] sm:$0xff] }
 0xaee   :  { %1097 = vmatpush.msra.mxu1 %v1300_v44 }
 0xb5e   :  { %v943_v46 = vpop.f32.mrf.mxu2 }
 0xb66   :  { %v946_v53 = vpop.f32.mrf.mxu2 }
 0xb68   :  { %v914_v47 = vpop.f32.mrf.mxu3 }
 0xb69   :  { %v944_v48 = vadd.f32 %v943_v46, %v914_v47  ;;  %v1299_v46 = vld [vmem:[%s1978_s12 + $0xb8] sm:$0xff]  ;;  %v1298_v47 = vld [vmem:[%s1978_s12 + $0xb0] sm:$0xff] }
 0xb6a   :  { %1098 = vmatpush.msra.mxu1 %v1299_v46 }
 0xb6b   :  { %v949_v51 = vadd.f32 %v944_v48, %v1750_v45  ;;  %v1297_v48 = vld [vmem:[%s1978_s12 + $0xa8] sm:$0xff] }
 0xb6c   :  { %1099 = vmatpush.msra.mxu1 %v1298_v47 }
 0xb6d   :  { %v1842_v52 = vadd.f32 %v1353_v50, %v949_v51  ;;  %v1295_v51 = vld [vmem:[%s1978_s12 + $0x98] sm:$0xff] }
 0xb6e   :  { %1100 = vmatpush.msra.mxu1 %v1297_v48 }
 0xb6f   :  { %v962_v14 = vsel %vm63_vm0, %v1842_v52, 0.0 }
 0xb70   :  { %963 = vadd.xlane.f32.xlu0 %v962_v14  ;;  %v917_v54 = vpop.f32.mrf.mxu3  ;;  %v1294_v14 = vld [vmem:[%s1978_s12 + $0x90] sm:$0xff] }
 0xb71   :  { %v947_v55 = vadd.f32 %v946_v53, %v917_v54  ;;  %v1293_v53 = vld [vmem:[%s1978_s12 + $0x88] sm:$0xff]  ;;  %v1292_v54 = vld [vmem:[%s1978_s12 + $0x80] sm:$0xff] }
 0xb73   :  { %v950_v56 = vadd.f32 %v947_v55, %v1755_v49  ;;  %v1356_v55 = vld [vmem:[%s1977_s11 + $0x1] ss:$0 sm:$0xff] }
 0xb75   :  { %v1847_v20 = vadd.f32 %v1353_v50, %v950_v56  ;;  %v1296_v50 = vld [vmem:[%s1978_s12 + $0xa0] sm:$0xff] }
 0xb76   :  { %1101 = vmatpush.msra.mxu1 %v1296_v50 }
 0xb77   :  { %v965_v57 = vsel %vm63_vm0, %v1847_v20, 0.0 }
 0xb78   :  { %966 = vadd.xlane.f32.xlu1 %v965_v57  ;;  %1102 = vmatpush.msra.mxu1 %v1295_v51 }
 0xb7a   :  { %1103 = vmatpush.msra.mxu1 %v1294_v14  ;;  %v1358_v14 = vld [vmem:[%s1980_s14] ss:$0 sm:$0xff]  ;;  %s1454_s14 = smov [#allocation2]  }
 0xb7c   :  { %1104 = vmatpush.msra.mxu1 %v1293_v53 }
 0xb7e   :  { %1105 = vmatpush.msra.mxu1 %v1292_v54 }
 0xbe3   :  { %v964_v58 = vpop.xlane.xlu0 %963 }
 0xbe4   :  { %v968_v45 = vmul.f32 %v964_v58, %v1561_v10 }
 0xbe6   :  { %v970_v59 = vsub.f32 %v1842_v52, %v968_v45 }
 0xbe8   :  { %v972_v60 = vmul.f32 %v970_v59, %v970_v59 }
 0xbea   :  { %v974_v61 = vsel %vm63_vm0, %v972_v60, 0.0 }
 0xbeb   :  { %975 = vadd.xlane.f32.xlu1 %v974_v61  ;;  %v967_v62 = vpop.xlane.xlu1 %966 }
 0xbec   :  { %v969_v63 = vmul.f32 %v967_v62, %v1561_v10 }
 0xbee   :  { %v971_v49 = vsub.f32 %v1847_v20, %v969_v63 }
 0xbf0   :  { %v973_v1 = vmul.f32 %v971_v49, %v971_v49 }
 0xbf2   :  { %v977_v3 = vsel %vm63_vm0, %v973_v1, 0.0 }
 0xbf3   :  { %978 = vadd.xlane.f32.xlu2 %v977_v3 }
 0xc5e   :  { %v976_v8 = vpop.xlane.xlu1 %975 }
 0xc5f   :  { %v980_v9 = vmul.f32 %v976_v8, %v1561_v10 }
 0xc61   :  { %v982_v11 = vadd.f32 1e-05, %v980_v9 }
 0xc63   :  { %1410 = vrsqrt.f32 %v982_v11  ;;  %vm990_vm7 = vweird.f32 %v982_v11 }
 0xc66   :  { %v979_v16 = vpop.xlane.xlu2 %978 }
 0xc67   :  { %v981_v17 = vmul.f32 %v979_v16, %v1561_v10  ;;  %v1357_v16 = vld [vmem:[%s1979_s13 + $0x1] ss:$0 sm:$0xff] }
 0xc69   :  { %v1411_v19 = vpop.eup %1410  ;;  %v983_v21 = vadd.f32 1e-05, %v981_v17 }
 0xc6a   :  { %v985_v22 = vmul.f32 %v1411_v19, %v982_v11  ;;  %vm991_vm6 = vweird.f32 %v1411_v19 }
 0xc6b   :  { %1412 = vrsqrt.f32 %v983_v21  ;;  %vm992_vm8 = vmor %vm990_vm7, %vm991_vm6  ;;  %vm1000_vm10 = vweird.f32 %v983_v21 }
 0xc6c   :  { %v986_v0 = vmul.f32 %v1411_v19, %v985_v22 }
 0xc6e   :  { %v987_v23 = vmul.f32 0.5, %v986_v0 }
 0xc70   :  { %v988_v24 = vsub.f32 1.5, %v987_v23 }
 0xc71   :  { %v1413_v25 = vpop.eup %1412 }
 0xc72   :  { %v989_v26 = vmul.f32 %v1411_v19, %v988_v24  ;;  %v995_v27 = vmul.f32 %v1413_v25, %v983_v21  ;;  %vm1001_vm9 = vweird.f32 %v1413_v25 }
 0xc73   :  { %vm1002_vm11 = vmor %vm1000_vm10, %vm1001_vm9 }
 0xc74   :  { %v993_v28 = vsel %vm992_vm8, %v1411_v19, %v989_v26  ;;  %v996_v29 = vmul.f32 %v1413_v25, %v995_v27 }
 0xc75   :  { %v1004_v30 = vmul.f32 %v993_v28, %v970_v59 }
 0xc76   :  { %v997_v32 = vmul.f32 0.5, %v996_v29 }
 0xc77   :  { %v1009_v33 = vmul.f32 %v1354_v2, %v1004_v30 }
 0xc78   :  { %v998_v34 = vsub.f32 1.5, %v997_v32 }
 0xc79   :  { %v1014_v35 = vadd.f32 %v1355_v31, %v1009_v33  ;;  %v1180_v33 = vld [vmem:[%s1982_s16 + $0x10] sm:$0xff] }
 0xc7a   :  { %v999_v36 = vmul.f32 %v1413_v25, %v998_v34  ;;  %v1179_v34 = vld [vmem:[%s1982_s16 + $0x8] sm:$0xff] }
 0xc7b   :  { %1290 = vmatmul.msk.f32.vlgmr.msra.gmra.mxu0 %vm63_vm0, %v1014_v35  ;;  %v1178_v35 = vld [vmem:[%s1982_s16] sm:$0xff] }
 0xc7c   :  { %v1003_v37 = vsel %vm1002_vm11, %v1413_v25, %v999_v36 }
 0xc7d   :  { %v1005_v38 = vmul.f32 %v1003_v37, %v971_v49 }
 0xc7f   :  { %v1010_v39 = vmul.f32 %v1354_v2, %v1005_v38 }
 0xc81   :  { %v1015_v40 = vadd.f32 %v1355_v31, %v1010_v39 }
 0xc83   :  { %1291 = vmatmul.msk.f32.gmra.mxu0 %vm63_vm0, %v1015_v40 }
 0xcf8   :  { %v1049_v56 = vpop.f32.mrf.mxu0 }
 0xcf9   :  { %v1050_v57 = vadd.f32 %v1356_v55, %v1049_v56 }
 0xcfb   :  { %v1057_v58 = vmul.f32 0.044715, %v1050_v57  ;;  %v1055_v7 = vmul.f32 0.5, %v1050_v57 }
 0xcfd   :  { %v1059_v45 = vmul.f32 %v1057_v58, %v1050_v57 }
 0xcff   :  { %v1061_v59 = vmul.f32 %v1059_v45, %v1050_v57 }
 0xd00   :  { %v1052_v60 = vpop.f32.mrf.mxu0 }
 0xd01   :  { %v1053_v61 = vadd.f32 %v1356_v55, %v1052_v60  ;;  %v1063_v62 = vadd.f32 %v1061_v59, %v1050_v57  ;;  %v1359_v55 = vld [vmem:[%s1981_s15] ss:$0 sm:$0xff]  ;;  %s1217_s15 = sshll.u32 %s1454_s14, 4  ;;  %s1218_s15 = int_to_ptr.vmem [resolvable:$true] %s1217_s15 }
 0xd03   :  { %v1065_v63 = vmul.f32 0.7978846, %v1063_v62  ;;  %v1058_v49 = vmul.f32 0.044715, %v1053_v61  ;;  %v1056_v12 = vmul.f32 0.5, %v1053_v61 }
 0xd05   :  { %1414 = vtanh.f32 %v1065_v63  ;;  %v1060_v1 = vmul.f32 %v1058_v49, %v1053_v61 }
 0xd07   :  { %v1062_v3 = vmul.f32 %v1060_v1, %v1053_v61 }
 0xd09   :  { %v1064_v4 = vadd.f32 %v1062_v3, %v1053_v61 }
 0xd0b   :  { %v1415_v5 = vpop.eup %1414  ;;  %v1066_v6 = vmul.f32 0.7978846, %v1064_v4 }
 0xd0c   :  { %v1069_v8 = vadd.f32 1.0, %v1415_v5 }
 0xd0d   :  { %1416 = vtanh.f32 %v1066_v6 }
 0xd0e   :  { %v1071_v9 = vmul.f32 %v1069_v8, %v1055_v7 }
 0xd10   :  { %1106 = vmatmul.f32.vlgmr.msra.gmra.mxu1 %v1071_v9 }
 0xd13   :  { %v1417_v11 = vpop.eup %1416 }
 0xd14   :  { %v1070_v13 = vadd.f32 1.0, %v1417_v11 }
 0xd16   :  { %v1072_v15 = vmul.f32 %v1070_v13, %v1056_v12 }
 0xd18   :  { %1109 = vmatmul.f32.gmra.mxu1 %v1072_v15 }
 0xd8d   :  { %v1107_v17 = vpop.f32.mrf.mxu1 }
 0xd8e   :  { %v1113_v18 = vadd.f32 %v1107_v17, %v1842_v52 }
 0xd90   :  { %v1120_v19 = vadd.f32 %v1357_v16, %v1113_v18 }
 0xd92   :  { %v1124_v21 = vsel %vm63_vm0, %v1120_v19, 0.0 }
 0xd93   :  { %1125 = vadd.xlane.f32.xlu1 %v1124_v21 }
 0xd95   :  { %v1110_v22 = vpop.f32.mrf.mxu1 }
 0xd96   :  { %v1114_v0 = vadd.f32 %v1110_v22, %v1847_v20  ;;  %v1181_v20 = vld [vmem:[%s1982_s16 + $0x18] sm:$0xff] }
 0xd97   :  { %1200 = vmatpush.msra.mxu3 %v1181_v20 }
 0xd98   :  { %v1121_v23 = vadd.f32 %v1357_v16, %v1114_v0 }
 0xd99   :  { %1201 = vmatpush.msra.mxu3 %v1180_v33 }
 0xd9a   :  { %v1127_v24 = vsel %vm63_vm0, %v1121_v23, 0.0 }
 0xd9b   :  { %1128 = vadd.xlane.f32.xlu1 %v1127_v24  ;;  %1202 = vmatpush.msra.mxu3 %v1179_v34 }
 0xd9d   :  { %1203 = vmatpush.msra.mxu3 %v1178_v35 }
 0xe06   :  { %v1126_v25 = vpop.xlane.xlu1 %1125 }
 0xe07   :  { %v1130_v26 = vmul.f32 %v1126_v25, %v1561_v10 }
 0xe09   :  { %v1132_v27 = vsub.f32 %v1120_v19, %v1130_v26 }
 0xe0b   :  { %v1134_v2 = vmul.f32 %v1132_v27, %v1132_v27 }
 0xe0d   :  { %v1136_v28 = vsel %vm63_vm0, %v1134_v2, 0.0 }
 0xe0e   :  { %1137 = vadd.xlane.f32.xlu1 %v1136_v28  ;;  %v1129_v52 = vpop.xlane.xlu1 %1128 }
 0xe0f   :  { %v1131_v29 = vmul.f32 %v1129_v52, %v1561_v10 }
 0xe11   :  { %v1133_v30 = vsub.f32 %v1121_v23, %v1131_v29 }
 0xe13   :  { %v1135_v31 = vmul.f32 %v1133_v30, %v1133_v30 }
 0xe15   :  { %v1139_v32 = vsel %vm63_vm0, %v1135_v31, 0.0 }
 0xe16   :  { %1140 = vadd.xlane.f32.xlu1 %v1139_v32 }
 0xe81   :  { %v1138_v36 = vpop.xlane.xlu1 %1137 }
 0xe82   :  { %v1142_v37 = vmul.f32 %v1138_v36, %v1561_v10 }
 0xe84   :  { %v1144_v38 = vadd.f32 1e-05, %v1142_v37 }
 0xe86   :  { %1418 = vrsqrt.f32 %v1144_v38  ;;  %vm1152_vm13 = vweird.f32 %v1144_v38 }
 0xe89   :  { %v1141_v39 = vpop.xlane.xlu1 %1140 }
 0xe8a   :  { %v1143_v40 = vmul.f32 %v1141_v39, %v1561_v10 }
 0xe8c   :  { %v1419_v41 = vpop.eup %1418  ;;  %v1145_v42 = vadd.f32 1e-05, %v1143_v40 }
 0xe8d   :  { %v1147_v43 = vmul.f32 %v1419_v41, %v1144_v38  ;;  %vm1153_vm12 = vweird.f32 %v1419_v41 }
 0xe8e   :  { %1420 = vrsqrt.f32 %v1145_v42  ;;  %vm1154_vm14 = vmor %vm1152_vm13, %vm1153_vm12  ;;  %vm1162_vm1 = vweird.f32 %v1145_v42 }
 0xe8f   :  { %v1148_v44 = vmul.f32 %v1419_v41, %v1147_v43 }
 0xe91   :  { %v1149_v46 = vmul.f32 0.5, %v1148_v44 }
 0xe93   :  { %v1150_v47 = vsub.f32 1.5, %v1149_v46 }
 0xe94   :  { %v1421_v48 = vpop.eup %1420 }
 0xe95   :  { %v1151_v50 = vmul.f32 %v1419_v41, %v1150_v47  ;;  %v1157_v51 = vmul.f32 %v1421_v48, %v1145_v42  ;;  %vm1163_vm15 = vweird.f32 %v1421_v48 }
 0xe96   :  { %vm1164_vm2 = vmor %vm1162_vm1, %vm1163_vm15 }
 0xe97   :  { %v1155_v53 = vsel %vm1154_vm14, %v1419_v41, %v1151_v50  ;;  %v1158_v54 = vmul.f32 %v1421_v48, %v1157_v51 }
 0xe98   :  { %v1166_v10 = vmul.f32 %v1155_v53, %v1132_v27 }
 0xe99   :  { %v1159_v56 = vmul.f32 0.5, %v1158_v54 }
 0xe9a   :  { %v1171_v57 = vmul.f32 %v1358_v14, %v1166_v10 }
 0xe9b   :  { %v1160_v58 = vsub.f32 1.5, %v1159_v56 }
 0xe9c   :  { %v1176_v45 = vadd.f32 %v1359_v55, %v1171_v57 }
 0xe9d   :  { %v1161_v59 = vmul.f32 %v1421_v48, %v1160_v58 }
 0xe9e   :  { %1309 = vmatmul.msk.f32.vlgmr.msra.gmra.mxu3 %vm63_vm0, %v1176_v45 }
 0xe9f   :  { %v1165_v60 = vsel %vm1164_vm2, %v1421_v48, %v1161_v59 }
 0xea0   :  { %v1167_v61 = vmul.f32 %v1165_v60, %v1133_v30 }
 0xea2   :  { %v1172_v62 = vmul.f32 %v1358_v14, %v1167_v61 }
 0xea4   :  { %v1177_v63 = vadd.f32 %v1359_v55, %v1172_v62 }
 0xea6   :  { %1310 = vmatmul.msk.f32.gmra.mxu3 %vm63_vm0, %v1177_v63 }
 0xf21   :  { %v1205_v49 = vpop.f32.mrf.mxu3 }
 0xf22   :  { %1211 = vst [vmem:[#allocation2] sm:$0xff] %v1205_v49 }
 0xf29   :  { %v1208_v1 = vpop.f32.mrf.mxu3 }
 0xf2a   :  { %1212 = vst [vmem:[#allocation2 + $0x8] sm:$0xff] %v1208_v1 }
 0xf2b   :  { %1225 = dma.vmem_to_hbm [thread:$0]  %s1218_s15, 256, %s1220_s20, [#allocation3], %s1455_s3, %s1455_s3, %s1456_s5  }
 0xf2c   :  { %1446 = dma.done.wait [#allocation3], 256  }
 0xf2d   :  { %1447 = vsyncadd [#allocation3], 4294967040 }
 0xf2e   :  { %1230 = vsyncpa [#allocation3], 1 }

</bundles_post_ra>
